<compile_context>
chip_gen: v6e
topology: v6e:2x2x1
jax: 0.10.0
libtpu: 0.0.40
codegen_flags: <defaults>
</compile_context>

<pallas_src>
import functools

import numpy as np
import jax
import jax.numpy as jnp
from jax.experimental import pallas as pl
from jax.experimental.pallas import tpu as pltpu


def _round_up(x, m):
    return ((x + m - 1) // m) * m


def _pick(cands, n, fallback):
    for t in cands:
        if n % t == 0:
            return t
    return fallback


def _largest_tile(n, cap):
    """Largest tile t dividing n with t <= cap.

    Returns n itself when n <= cap (full-dim blocks are always legal);
    otherwise the largest multiple of 128 <= cap dividing n (callers guarantee
    n is a multiple of 128 in that case, so 128 is a valid fallback)."""
    if n <= cap:
        return n
    t = (cap // 128) * 128
    while t > 128:
        if n % t == 0:
            return t
        t -= 128
    return 128


def _maybe_buffered(shape, index_map, buffers):
    """BlockSpec with a deeper pipeline when supported, plain BlockSpec otherwise."""
    if buffers is not None:
        try:
            return pl.BlockSpec(shape, index_map,
                                pipeline_mode=pl.Buffered(buffers))
        except Exception:  # pipeline_mode / Buffered unavailable -> default depth
            pass
    return pl.BlockSpec(shape, index_map)


# ----------------------------------------------------------------------------
# Pallas kernel 1: tiled MXU matmul with fused BN/bias (+ residual) (+ ReLU)
# epilogue.  A(M,K)bf16 @ B(K,N)bf16 -> f32 accumulate -> y = acc*scale + shift
# (+ residual) (ReLU) -> out dtype.
# ----------------------------------------------------------------------------
def _mm_fused_kernel(*refs, relu, has_res):
    if has_res:
        a_ref, b_ref, s_ref, t_ref, r_ref, o_ref, acc_ref = refs
    else:
        a_ref, b_ref, s_ref, t_ref, o_ref, acc_ref = refs
        r_ref = None

    @pl.when(pl.program_id(2) == 0)
    def _():
        acc_ref[...] = jnp.zeros_like(acc_ref)

    acc_ref[...] += jnp.dot(a_ref[...], b_ref[...],
                            preferred_element_type=jnp.float32)

    @pl.when(pl.program_id(2) == pl.num_programs(2) - 1)
    def _():
        y = acc_ref[...] * s_ref[...] + t_ref[...]
        if r_ref is not None:
            y = y + r_ref[...].astype(jnp.float32)
        if relu:
            y = jnp.maximum(y, 0.0)
        o_ref[...] = y.astype(o_ref.dtype)


def matmul_bn_act(a, b, scale, shift, residual=None, *, relu,
                  out_dtype=jnp.bfloat16):
    """(M,K)@(K,N) with fused scale/shift (+residual) (+ReLU) epilogue."""
    M, K = a.shape
    _, N = b.shape

    Mp = _round_up(M, 8) if M <= 128 else _round_up(M, 128)
    if Mp != M:
        a = jnp.pad(a, ((0, Mp - M), (0, 0)))
        if residual is not None:
            residual = jnp.pad(residual, ((0, Mp - M), (0, 0)))

    small_m = Mp <= 128
    if small_m:
        # Deep-encoder / first-decoder regime: weight(B)-streaming bound.
        # One M tile, full-Cout N tile, K tile as large as a ~4 MiB streamed
        # weight block allows, and a deeper weight pipeline.
        TM = Mp
        TN = N
        cap_k = max(128, min(2048, (4 * 1024 * 1024) // (2 * TN)))
        TK = _largest_tile(K, cap_k)
    else:
        TM = Mp if Mp <= 512 else _pick((512, 256, 128), Mp, 128)
        TN = _pick((256, 128), N, N)
        TK = _largest_tile(K, 2048)

    k_steps = K // TK
    b_buffers = 3 if (small_m and k_steps >= 2) else None

    has_res = residual is not None
    in_specs = [
        pl.BlockSpec((TM, TK), lambda i, j, k: (i, k)),
        _maybe_buffered((TK, TN), lambda i, j, k: (k, j), b_buffers),
        pl.BlockSpec((1, TN), lambda i, j, k: (0, j)),
        pl.BlockSpec((1, TN), lambda i, j, k: (0, j)),
    ]
    args = [a, b, scale, shift]
    if has_res:
        in_specs.append(pl.BlockSpec((TM, TN), lambda i, j, k: (i, j)))
        args.append(residual)

    bytes_accessed = sum(int(x.size) * x.dtype.itemsize for x in args)
    bytes_accessed += Mp * N * jnp.dtype(out_dtype).itemsize

    out = pl.pallas_call(
        functools.partial(_mm_fused_kernel, relu=relu, has_res=has_res),
        out_shape=jax.ShapeDtypeStruct((Mp, N), out_dtype),
        grid=(Mp // TM, N // TN, k_steps),
        in_specs=in_specs,
        out_specs=pl.BlockSpec((TM, TN), lambda i, j, k: (i, j)),
        scratch_shapes=[pltpu.VMEM((TM, TN), jnp.float32)],
        compiler_params=pltpu.CompilerParams(
            dimension_semantics=("parallel", "parallel", "arbitrary")),
        cost_estimate=pl.CostEstimate(flops=2 * Mp * K * N,
                                      transcendentals=0,
                                      bytes_accessed=int(bytes_accessed)),
    )(*args)
    return out[:M] if Mp != M else out


# ----------------------------------------------------------------------------
# Conv + BN(+bias) + (residual) + (ReLU), all in one Pallas matmul.
# ----------------------------------------------------------------------------
@functools.partial(jax.jit, static_argnames=("stride", "padding", "relu", "out_dtype"))
def conv_bn_act(x, w, stride, padding, scale, shift, *, relu,
                residual=None, out_dtype=jnp.bfloat16):
    """x: (B,H,W,Cin) bf16 NHWC; w: (KH,KW,Cin,Cout) bf16; scale/shift: (1,Cout) f32."""
    B, H, W, Cin = x.shape
    KH, KW, _, Cout = w.shape
    OH = (H + 2 * padding - KH) // stride + 1
    OW = (W + 2 * padding - KW) // stride + 1
    K = KH * KW * Cin
    Kp = _round_up(K, 128)

    if KH == 1 and KW == 1 and padding == 0:
        xs = x if stride == 1 else x[:, ::stride, ::stride, :]
        a = xs.reshape(B * OH * OW, Cin)
        if Kp != K:
            a = jnp.pad(a, ((0, 0), (0, Kp - K)))
    else:
        # TODO(synk): im2col is still materialized in HBM (bf16, K pre-padded);
        #             a manual-DMA streaming variant would cut this further.
        xp = jnp.pad(x, ((0, 0), (padding, padding), (padding, padding), (0, 0)))
        cols = [xp[:, kh:kh + stride * (OH - 1) + 1:stride,
                    kw:kw + stride * (OW - 1) + 1:stride, :]
                for kh in range(KH) for kw in range(KW)]
        if Kp != K:
            cols.append(jnp.zeros((B, OH, OW, Kp - K), x.dtype))
        a = jnp.concatenate(cols, axis=-1).reshape(B * OH * OW, Kp)

    wk = w.reshape(K, Cout)
    if Kp != K:
        wk = jnp.pad(wk, ((0, Kp - K), (0, 0)))

    res = None if residual is None else residual.reshape(B * OH * OW, Cout)
    y = matmul_bn_act(a, wk, scale, shift, res, relu=relu, out_dtype=out_dtype)
    return y.reshape(B, OH, OW, Cout)


# ----------------------------------------------------------------------------
# Pallas kernel 2: 3x3 / stride-2 / pad-1 max-pool.
# The padded input is de-interleaved (even/odd rows x even/odd cols) once in
# XLA so the kernel only needs contiguous static slices of quarter-size arrays;
# the 9-tap window max runs fully in-kernel with grid=(B,).
# ----------------------------------------------------------------------------
def _maxpool_kernel(ee_ref, eo_ref, oe_ref, oo_ref, o_ref):
    OH, OW = o_ref.shape[1], o_ref.shape[2]
    m = ee_ref[0, 0:OH, 0:OW, :]
    m = jnp.maximum(m, ee_ref[0, 0:OH, 1:OW + 1, :])
    m = jnp.maximum(m, ee_ref[0, 1:OH + 1, 0:OW, :])
    m = jnp.maximum(m, ee_ref[0, 1:OH + 1, 1:OW + 1, :])
    m = jnp.maximum(m, eo_ref[0, 0:OH, 0:OW, :])
    m = jnp.maximum(m, eo_ref[0, 1:OH + 1, 0:OW, :])
    m = jnp.maximum(m, oe_ref[0, 0:OH, 0:OW, :])
    m = jnp.maximum(m, oe_ref[0, 0:OH, 1:OW + 1, :])
    m = jnp.maximum(m, oo_ref[0, 0:OH, 0:OW, :])
    o_ref[0] = m


@jax.jit
def maxpool_3x3_s2_p1(x):
    B, H, W, C = x.shape                       # H, W even
    OH = (H + 2 - 3) // 2 + 1
    OW = (W + 2 - 3) // 2 + 1
    xp = jnp.pad(x, ((0, 0), (1, 1), (1, 1), (0, 0)),
                 constant_values=-jnp.inf)
    ee = xp[:, 0::2, 0::2, :]                  # (B, OH+1, OW+1, C)
    eo = xp[:, 0::2, 1::2, :]
    oe = xp[:, 1::2, 0::2, :]
    oo = xp[:, 1::2, 1::2, :]

    def _spec(arr):
        h, w = arr.shape[1], arr.shape[2]
        return pl.BlockSpec((1, h, w, C), lambda b: (b, 0, 0, 0))

    return pl.pallas_call(
        _maxpool_kernel,
        out_shape=jax.ShapeDtypeStruct((B, OH, OW, C), x.dtype),
        grid=(B,),
        in_specs=[_spec(ee), _spec(eo), _spec(oe), _spec(oo)],
        out_specs=pl.BlockSpec((1, OH, OW, C), lambda b: (b, 0, 0, 0)),
        compiler_params=pltpu.CompilerParams(dimension_semantics=("parallel",)),
    )(ee, eo, oe, oo)


# ----------------------------------------------------------------------------
# Pallas kernel 3: 2x bilinear upsample (align_corners=True), whole image per
# program (grid=(B,)).  W-interp = one batched MXU matmul over the H input
# rows (C stays on lanes), H-interp = one lane-dense matmul on the flattened
# (2W*C) rows; the output block is a single lane-dense (2H, 2W*C) slab.
# ----------------------------------------------------------------------------
def _upsample_kernel(x_ref, lh_ref, lw_ref, o_ref):
    _, H, W, C = x_ref.shape
    H2 = lh_ref.shape[0]
    W2 = lw_ref.shape[0]
    x = x_ref[0].astype(jnp.float32)                              # (H, W, C)
    lwb = jnp.broadcast_to(lw_ref[...], (H, W2, W))               # (H, 2W, W)
    xw = jnp.einsum("how,hwc->hoc", lwb, x,
                    preferred_element_type=jnp.float32)           # (H, 2W, C)
    y = jnp.dot(lh_ref[...], xw.reshape(H, W2 * C),
                preferred_element_type=jnp.float32)               # (2H, 2W*C)
    o_ref[0] = y.astype(o_ref.dtype)


def _interp_matrix(n_in):
    """1-D bilinear x2 upsample, align_corners=True, as a (2n, n) matrix."""
    n_out = 2 * n_in
    m = np.zeros((n_out, n_in), np.float32)
    for i in range(n_out):
        src = 0.0 if n_in == 1 else i * (n_in - 1) / (n_out - 1)
        lo = int(np.floor(src))
        hi = min(lo + 1, n_in - 1)
        fr = src - lo
        m[i, lo] += 1.0 - fr
        m[i, hi] += fr
    return jnp.asarray(m)


@jax.jit
def upsample2x_bilinear(x):
    B, H, W, C = x.shape
    H2, W2 = 2 * H, 2 * W
    lh = _interp_matrix(H)          # (2H, H) f32
    lw = _interp_matrix(W)          # (2W, W) f32
    y = pl.pallas_call(
        _upsample_kernel,
        out_shape=jax.ShapeDtypeStruct((B, H2, W2 * C), x.dtype),
        grid=(B,),
        in_specs=[
            pl.BlockSpec((1, H, W, C), lambda b: (b, 0, 0, 0)),
            pl.BlockSpec((H2, H), lambda b: (0, 0)),
            pl.BlockSpec((W2, W), lambda b: (0, 0)),
        ],
        out_specs=pl.BlockSpec((1, H2, W2 * C), lambda b: (b, 0, 0)),
        compiler_params=pltpu.CompilerParams(dimension_semantics=("parallel",)),
    )(x, lh, lw)
    return y.reshape(B, H2, W2, C)
    # TODO(synk): fusing this upsample into the following decoder conv's
    #             A-producer (it is linear) would avoid the 4x-larger HBM
    #             round trip of the upsampled tensor.


# ----------------------------------------------------------------------------
# Deterministic parameter construction (mirrors the PyTorch module shapes)
# ----------------------------------------------------------------------------
class _KeyGen:
    def __init__(self, seed):
        self._key = jax.random.PRNGKey(seed)
        self._i = 0

    def __call__(self):
        self._i += 1
        return jax.random.fold_in(self._key, self._i)


def _conv_w(kg, kh, kw, cin, cout):
    fan_in = kh * kw * cin
    w = jax.random.normal(kg(), (kh, kw, cin, cout), jnp.float32) * np.sqrt(2.0 / fan_in)
    return w.astype(jnp.bfloat16)


def _bn_params(kg, c, conv_bias=None, eps=1e-5):
    gamma = jax.random.uniform(kg(), (c,), jnp.float32, 0.8, 1.2)
    beta = jax.random.normal(kg(), (c,), jnp.float32) * 0.1
    mean = jax.random.normal(kg(), (c,), jnp.float32) * 0.1
    var = jax.random.uniform(kg(), (c,), jnp.float32, 0.8, 1.2)
    scale = gamma / jnp.sqrt(var + eps)
    shift = beta - mean * scale
    if conv_bias is not None:
        shift = shift + conv_bias * scale
    return scale.reshape(1, c), shift.reshape(1, c)


def _init_bottleneck(kg, inplanes, planes, stride):
    p = {
        "w1": _conv_w(kg, 1, 1, inplanes, planes), "bn1": _bn_params(kg, planes),
        "w2": _conv_w(kg, 3, 3, planes, planes), "bn2": _bn_params(kg, planes),
        "w3": _conv_w(kg, 1, 1, planes, planes * 4), "bn3": _bn_params(kg, planes * 4),
        "stride": stride, "wd": None, "bnd": None,
    }
    if stride != 1 or inplanes != planes * 4:
        p["wd"] = _conv_w(kg, 1, 1, inplanes, planes * 4)
        p["bnd"] = _bn_params(kg, planes * 4)
    return p


def init_res_segnet(n_classes, seed=1):
    kg = _KeyGen(seed)
    params = {"conv1_w": _conv_w(kg, 7, 7, 3, 64), "bn1": _bn_params(kg, 64)}
    layers = []
    inplanes = 64
    # ResNet-101: (planes, blocks, stride) per stage
    for planes, nblocks, stride in ((64, 3, 1), (128, 4, 2), (256, 23, 2), (512, 3, 2)):
        blocks = [_init_bottleneck(kg, inplanes, planes, stride)]
        inplanes = planes * 4
        for _ in range(nblocks - 1):
            blocks.append(_init_bottleneck(kg, inplanes, planes, 1))
        layers.append(blocks)
    params["layers"] = layers
    decs = []
    for cin, cout in ((2048, 1024), (1024, 512), (512, 256), (256, 64), (64, 64)):
        w = _conv_w(kg, 3, 3, cin, cout)
        b = jax.random.normal(kg(), (cout,), jnp.float32) * 0.01
        decs.append({"w": w, "bn": _bn_params(kg, cout, conv_bias=b)})
    params["decoders"] = decs
    # Classifier: zero-pad output channels to a lane-dense multiple of 128 once
    # at init (lane-dense stores); the real logits are sliced out at the end.
    ncp = _round_up(n_classes, 128)
    cls_w = _conv_w(kg, 1, 1, 64, n_classes)
    cls_b = jax.random.normal(kg(), (n_classes,), jnp.float32) * 0.01
    params["cls_w"] = jnp.pad(cls_w, ((0, 0), (0, 0), (0, 0), (0, ncp - n_classes)))
    params["cls_b"] = jnp.pad(cls_b, (0, ncp - n_classes))
    params["n_classes"] = n_classes
    return params


# ----------------------------------------------------------------------------
# Forward pass
# ----------------------------------------------------------------------------
def _bottleneck_forward(x, p):
    out = conv_bn_act(x, p["w1"], 1, 0, *p["bn1"], relu=True)
    out = conv_bn_act(out, p["w2"], p["stride"], 1, *p["bn2"], relu=True)
    if p["wd"] is not None:
        idn = conv_bn_act(x, p["wd"], p["stride"], 0, *p["bnd"], relu=False)
    else:
        idn = x
    # conv3 + BN3 + residual add + ReLU fused into one matmul epilogue
    return conv_bn_act(out, p["w3"], 1, 0, *p["bn3"], relu=True, residual=idn)


def res_segnet_forward(x_nchw, params):
    x = jnp.transpose(x_nchw, (0, 2, 3, 1)).astype(jnp.bfloat16)   # NCHW -> NHWC
    # --- encoder (ResNet-101 minus avgpool/fc) ---
    x = conv_bn_act(x, params["conv1_w"], 2, 3, *params["bn1"], relu=True)
    x = maxpool_3x3_s2_p1(x)
    for layer in params["layers"]:
        for blk in layer:
            x = _bottleneck_forward(x, blk)
    # --- decoders (upsample 2x + conv3x3 + BN + ReLU, BN/bias/ReLU fused) ---
    for dec in params["decoders"]:
        x = upsample2x_bilinear(x)
        x = conv_bn_act(x, dec["w"], 1, 1, *dec["bn"], relu=True)
    # --- classifier (1x1 conv, bias fused into the matmul epilogue) ---
    ncp = params["cls_w"].shape[-1]
    ones = jnp.ones((1, ncp), jnp.float32)
    bias = params["cls_b"].reshape(1, ncp)
    x = conv_bn_act(x, params["cls_w"], 1, 0, ones, bias, relu=False,
                    out_dtype=jnp.float32)
    x = x[..., :params["n_classes"]]
    return jnp.transpose(x, (0, 3, 1, 2))                           # NHWC -> NCHW


if __name__ == "__main__":
    n_classes = 3
    params = init_res_segnet(n_classes, seed=1)

    key = jax.random.PRNGKey(0)
    # Encoder downsamples 32x, the five decoders upsample 32x back ->
    # H, W must be a multiple of 32.
    x = jax.random.normal(key, (2, 3, 64, 64), jnp.float32)

    y = res_segnet_forward(x, params)
    y = jax.block_until_ready(y)

    assert y.shape == (2, n_classes, 64, 64), y.shape
    assert bool(jnp.all(jnp.isfinite(y)))
    print("KERNEL_OK")
</pallas_src>

<mosaic_0001>
module attributes {stable_mosaic.version = 11 : i64} {
  func.func @_mm_fused_kernel(%arg0: i32, %arg1: i32, %arg2: i32, %arg3: memref<512x256xbf16, #tpu.memory_space<vmem>>, %arg4: memref<256x64xbf16, #tpu.memory_space<vmem>>, %arg5: memref<1x64xf32, #tpu.memory_space<vmem>>, %arg6: memref<1x64xf32, #tpu.memory_space<vmem>>, %arg7: memref<512x64xbf16, #tpu.memory_space<vmem>>, %arg8: memref<512x64xf32, #tpu.memory_space<vmem>>) attributes {dimension_semantics = [#tpu.dimension_semantics<parallel>, #tpu.dimension_semantics<parallel>, #tpu.dimension_semantics<arbitrary>], iteration_bounds = array<i64: 4, 1, 1>, scalar_prefetch = 0 : i64, scratch_operands = 1 : i64, tpu.core_type = #tpu.core_type<tc>, window_params = [{transform_indices = @transform_0, window_bounds = array<i64: 512, 256>}, {transform_indices = @transform_1, window_bounds = array<i64: 256, 64>}, {transform_indices = @transform_2, window_bounds = array<i64: 1, 64>}, {transform_indices = @transform_3, window_bounds = array<i64: 1, 64>}, {transform_indices = @transform_4, window_bounds = array<i64: 512, 64>}]} {
    %c0_i32 = arith.constant 0 : i32
    %0 = arith.cmpi eq, %arg2, %c0_i32 : i32
    %1 = arith.extui %0 : i1 to i32
    %c0_i32_0 = arith.constant 0 : i32
    %2 = arith.cmpi ne, %1, %c0_i32_0 : i32
    scf.if %2 {
      %cst_10 = arith.constant 0.000000e+00 : f32
      %12 = vector.broadcast %cst_10 : f32 to vector<512x64xf32>
      %c0_11 = arith.constant 0 : index
      %c0_12 = arith.constant 0 : index
      %13 = vector.load %arg8[%c0_11, %c0_12] : memref<512x64xf32, #tpu.memory_space<vmem>>, vector<512x64xf32>
      tpu.vector_store %arg8[%c0_11, %c0_12], %12 {strides = array<i32>} : memref<512x64xf32, #tpu.memory_space<vmem>>, vector<512x64xf32>,
    } else {
    }
    %c0 = arith.constant 0 : index
    %c0_1 = arith.constant 0 : index
    %3 = vector.load %arg8[%c0, %c0_1] : memref<512x64xf32, #tpu.memory_space<vmem>>, vector<512x64xf32>
    %c0_2 = arith.constant 0 : index
    %c0_3 = arith.constant 0 : index
    %4 = vector.load %arg3[%c0_2, %c0_3] : memref<512x256xbf16, #tpu.memory_space<vmem>>, vector<512x256xbf16>
    %c0_4 = arith.constant 0 : index
    %c0_5 = arith.constant 0 : index
    %5 = vector.load %arg4[%c0_4, %c0_5] : memref<256x64xbf16, #tpu.memory_space<vmem>>, vector<256x64xbf16>
    %cst = arith.constant dense<0.000000e+00> : vector<512x64xf32>
    %6 = tpu.matmul %4, %5, %cst {dimension_numbers = #tpu.dot_dimension_numbers<[1], [0], [0], [1], [0, 0, 1, 1], [], []>} : vector<512x256xbf16>, vector<256x64xbf16>, vector<512x64xf32> -> vector<512x64xf32>
    %7 = arith.addf %3, %6 : vector<512x64xf32>
    %c0_6 = arith.constant 0 : index
    %c0_7 = arith.constant 0 : index
    %8 = vector.load %arg8[%c0_6, %c0_7] : memref<512x64xf32, #tpu.memory_space<vmem>>, vector<512x64xf32>
    tpu.vector_store %arg8[%c0_6, %c0_7], %7 {strides = array<i32>} : memref<512x64xf32, #tpu.memory_space<vmem>>, vector<512x64xf32>,
    %c0_i32_8 = arith.constant 0 : i32
    %9 = arith.cmpi eq, %arg2, %c0_i32_8 : i32
    %10 = arith.extui %9 : i1 to i32
    %c0_i32_9 = arith.constant 0 : i32
    %11 = arith.cmpi ne, %10, %c0_i32_9 : i32
    scf.if %11 {
      %c0_10 = arith.constant 0 : index
      %c0_11 = arith.constant 0 : index
      %12 = vector.load %arg8[%c0_10, %c0_11] : memref<512x64xf32, #tpu.memory_space<vmem>>, vector<512x64xf32>
      %c0_12 = arith.constant 0 : index
      %c0_13 = arith.constant 0 : index
      %13 = vector.load %arg5[%c0_12, %c0_13] : memref<1x64xf32, #tpu.memory_space<vmem>>, vector<1x64xf32>
      %14 = vector.broadcast %13 : vector<1x64xf32> to vector<512x64xf32>
      %15 = arith.mulf %12, %14 : vector<512x64xf32>
      %c0_14 = arith.constant 0 : index
      %c0_15 = arith.constant 0 : index
      %16 = vector.load %arg6[%c0_14, %c0_15] : memref<1x64xf32, #tpu.memory_space<vmem>>, vector<1x64xf32>
      %17 = vector.broadcast %16 : vector<1x64xf32> to vector<512x64xf32>
      %18 = arith.addf %15, %17 : vector<512x64xf32>
      %cst_16 = arith.constant 0.000000e+00 : f32
      %19 = vector.broadcast %cst_16 : f32 to vector<512x64xf32>
      %20 = arith.maximumf %18, %19 : vector<512x64xf32>
      %21 = arith.truncf %20 : vector<512x64xf32> to vector<512x64xbf16>
      %c0_17 = arith.constant 0 : index
      %c0_18 = arith.constant 0 : index
      %22 = vector.load %arg7[%c0_17, %c0_18] : memref<512x64xbf16, #tpu.memory_space<vmem>>, vector<512x64xbf16>
      tpu.vector_store %arg7[%c0_17, %c0_18], %21 {strides = array<i32>} : memref<512x64xbf16, #tpu.memory_space<vmem>>, vector<512x64xbf16>,
    } else {
    }
    return
  }
  func.func @transform_0(%arg0: i32, %arg1: i32, %arg2: i32) -> (i32, i32) {
    %c0_i32 = arith.constant 0 : i32
    return %arg0, %arg2 : i32, i32
  }
  func.func @transform_1(%arg0: i32, %arg1: i32, %arg2: i32) -> (i32, i32) {
    %c0_i32 = arith.constant 0 : i32
    return %arg2, %arg1 : i32, i32
  }
  func.func @transform_2(%arg0: i32, %arg1: i32, %arg2: i32) -> (i32, i32) {
    %c0_i32 = arith.constant 0 : i32
    %c0_i32_0 = arith.constant 0 : i32
    return %c0_i32, %arg1 : i32, i32
  }
  func.func @transform_3(%arg0: i32, %arg1: i32, %arg2: i32) -> (i32, i32) {
    %c0_i32 = arith.constant 0 : i32
    %c0_i32_0 = arith.constant 0 : i32
    return %c0_i32, %arg1 : i32, i32
  }
  func.func @transform_4(%arg0: i32, %arg1: i32, %arg2: i32) -> (i32, i32) {
    %c0_i32 = arith.constant 0 : i32
    return %arg0, %arg1 : i32, i32
  }
}

</mosaic_0001>

<bundles_post_ra>
// kernel: conv_bn_act.1
= control target key start
LH: loop header
LB: loop body
LE: loop exit
PB: predicated region body
PF: predicated region fallthrough
CT: control target
= control target key end

     0   :  { %9 = vsyncpa [#allocation4], 0  ;;  %s3376_s0 = inlined_call_operand.vmem [shape: bf16[2048,256], index: 0, kind: input, shape index: {}]   ;;  %s3377_s1 = inlined_call_operand.vmem [shape: bf16[256,64], index: 1, kind: input, shape index: {}]   ;;  %s3378_s2 = inlined_call_operand.vmem [shape: f32[1,64], index: 2, kind: input, shape index: {}]   ;;  %s3379_s3 = inlined_call_operand.vmem [shape: f32[1,64], index: 3, kind: input, shape index: {}]   ;;  %s3380_s4 = inlined_call_operand.hbm [shape: bf16[2048,64], index: 4, kind: output, shape index: {}]  }
   0x1   :  { %11 = vsyncpa [#allocation4 + $0x1], 0  ;;  %s2638_s15 = smov 0   ;;  %s2640_s16 = smov 0  }
   0x2   :  { %s2642_s17 = smov 0   ;;  %s2644_s18 = smov 0  }
   0x3   :  { %s2646_s19 = smov 0   ;;  %s2648_s20 = smov 0  }
   0x4 LB: > { %s2096_s21 = sadd.s32 4294967295, %s2606_s20   ;;  %s2097_s22 = sadd.s32 4294967294, %s2606_s20   ;;  %s2606_s20 = sphi %s2648_s20, %s17_s20   ;;  %s2602_s19 = sphi %s2646_s19, %s3387_s19   ;;  %s2598_s18 = sphi %s2644_s18, %s3386_s18   ;;  %s2594_s17 = sphi %s2642_s17, %s3385_s17   ;;  %s2590_s16 = sphi %s2640_s16, %s3384_s16   ;;  %s2586_s15 = sphi %s2638_s15, %s3383_s15  }
   0x5   : > { %s36_s23 = sadd.s32 1, %s2602_s19  ;;  %s153_s24 = sadd.s32 1, %s2594_s17 }
   0x6   : > { %p38_p0 = scmp.ge.s32.totalorder %s36_s23, 4  ;;  %p163_p1 = scmp.ne.s32.totalorder %s2594_s17, %s2590_s16 }
   0x7   : > { %p164_p2 = scmp.eq.s32.totalorder %s2096_s21, 3  ;;  %p169_p3 = scmp.ne.s32.totalorder %s2590_s16, %s2586_s15 }
   0x8   : > { %s3389_s23 = smov (%p38_p0, %s36_s23), 0  ;;  %p170_p5 = scmp.eq.s32.totalorder %s2097_s22, 3 }
   0x9   : > { %p2678_p4 = por %p164_p2, %p163_p1  ;;  %s148_s26 = ssub.s32 %s2602_s19, %s3389_s23 }
   0xa   : > { %p2103_p6 = scmp.ge.s32.totalorder %s2606_s20, 1  ;;  %p151_p7 = scmp.eq.s32.totalorder %s148_s26, 0 }
   0xb   : > { %p2685_p8 = por %p170_p5, %p169_p3  ;;  %p227_p9 = scmp.lt.s32.totalorder %s2606_s20, 5 }
   0xc   : > { %s2691_s28 = scalar_select %p151_p7, %s2594_s17, %s153_s24  }
   0xd   : > { %p228_p10 = pnand %p2103_p6, %p227_p9 }
   0xe   : > { %s2105_s5 = sshll.u32 (!%p228_p10), %s2598_s18, 6  ;;  %s2324_s30 = sshll.u32 (!%p228_p10), %s2598_s18, 12 }
   0xf   : > { %231 = sbr.rel (%p228_p10) target bundleno = 435 (0x1b3), region = 36  ;;  %p274_p11 = scmp.lt.s32.totalorder (!%p228_p10), %s2105_s5, 255 }
  0x10   : > { %s3321_s8 = scalar_lea.hbm (!%p228_p10), %s3380_s4, %s2324_s30  ;;  %s2610_s9 = smov (!%p228_p10), [#allocation3]  }
  0x11   : > { %s2534_s10 = sshll.u32 (!%p228_p10), %s2610_s9, 4  ;;  %s2535_s10 = int_to_ptr.vmem [resolvable:$false] %s2534_s10 }
  0x12   : > { %s2536_s11 = scalar_lea.vmem (!%p228_p10), %s2535_s10, 8192 }
  0x14   : > { %v2416_v0 = vld [vmem:[%s3377_s1 + $0x38] sm:$0xff]   ;;  %v2608_v1 = vmov 0   ;;  %v2417_v2 = vld [vmem:[%s3377_s1 + $0x30] sm:$0xff]   ;;  %v2418_v3 = vld [vmem:[%s3377_s1 + $0x28] sm:$0xff]   ;;  %s3391_s5 = smov (!%p274_p11, %s2105_s5), 255  ;;  %vm305_vm0 = vcmask 523264  }
  0x15   : > { %946 = vmatprep.subr.bf16.mxu0 %v2608_v1  ;;  %2325 = vmatprep.subr.bf16.mxu1 %v2608_v1  ;;  %v2419_v4 = vld [vmem:[%s3377_s1 + $0x20] sm:$0xff]   ;;  %s2259_s12 = sshll.u32 %s3391_s5, 3  ;;  %v2420_v5 = vld [vmem:[%s3377_s1 + $0x18] sm:$0xff]   ;;  %v2421_v7 = vld [vmem:[%s3377_s1 + $0x10] sm:$0xff]   ;;  %v2609_v19 = vmov 0.0   ;;  %vm1893_vm1 = vcmask 519168  }
  0x16   : > { %947 = vmatpush1.bf16.msra.mxu0 %v2416_v0  ;;  %2341 = vmatpush1.bf16.msra.mxu1 %v2416_v0  ;;  %s2720_s24 = scalar_lea.vmem %s3376_s0, %s2259_s12  ;;  %v2422_v9 = vld [vmem:[%s3377_s1 + $0x8] sm:$0xff]   ;;  %v2423_v10 = vld [vmem:[%s3377_s1] sm:$0xff]   ;;  %v2424_v11 = vld [vmem:[%s3377_s1 + $0x78] sm:$0xff]   ;;  %306 = vst.msk [vmem:[#allocation2] sm:$0xff] %vm305_vm0, %v2609_v19  ;;  %s269_s12 = sand.u32 1, %s2590_s16  }
  0x17   : > { %948 = vmatprep.subr.bf16.mxu0 %v2608_v1  ;;  %2326 = vmatprep.subr.bf16.mxu1 %v2608_v1  ;;  %v2434_v6 = vld [vmem:[%s2720_s24 + $0x4] ss:$8 sps:$4 sm:$0xff]   ;;  %v2425_v12 = vld [vmem:[%s3377_s1 + $0x70] sm:$0xff]   ;;  %v2428_v15 = vld [vmem:[%s3377_s1 + $0x58] sm:$0xff]   ;;  %307 = vst.msk [vmem:[#allocation2 + $0x8] sm:$0xff] %vm305_vm0, %v2609_v19  ;;  %s2104_s13 = sshll.u32 %s269_s12, 8 }
  0x18   : > { %v2437_v8 = vld [vmem:[%s2720_s24 + $0x104] ss:$8 sps:$4 sm:$0xff]   ;;  %978 = vmatprep.mubr.bf16.mxu0 %v2434_v6  ;;  %v2429_v16 = vld [vmem:[%s3377_s1 + $0x50] sm:$0xff]   ;;  %308 = vst.msk [vmem:[#allocation2 + $0x10] sm:$0xff] %vm305_vm0, %v2609_v19  ;;  %309 = vst.msk [vmem:[#allocation2 + $0x18] sm:$0xff] %vm305_vm0, %v2609_v19  ;;  %s3004_s14 = scalar_lea.vmem [#allocation3], %s2104_s13 }
  0x19   : > { %1106 = vmatprep.mubr.bf16.mxu1 %v2437_v8  ;;  %v2426_v13 = vld [vmem:[%s3377_s1 + $0x68] sm:$0xff]   ;;  %v2427_v14 = vld [vmem:[%s3377_s1 + $0x60] sm:$0xff]   ;;  %310 = vst.msk [vmem:[#allocation2 + $0x20] sm:$0xff] %vm305_vm0, %v2609_v19  ;;  %311 = vst.msk [vmem:[#allocation2 + $0x28] sm:$0xff] %vm305_vm0, %v2609_v19  ;;  %s1973_s5 = sshll.u32 %s3004_s14, 4  ;;  %s3331_s18 = scalar_lea.sflag [#allocation4], %s269_s12  ;;  %s3323_s5 = int_to_ptr.vmem [resolvable:$true] %s1973_s5 }
  0x1a   : > { %949 = vmatpush1.bf16.msra.mxu0 %v2417_v2  ;;  %2342 = vmatpush1.bf16.msra.mxu1 %v2417_v2  ;;  %v2430_v17 = vld [vmem:[%s3377_s1 + $0x48] sm:$0xff]   ;;  %v2779_v18 = vld [vmem:[%s3377_s1 + $0x40] sm:$0xff]   ;;  %312 = vst.msk [vmem:[#allocation2 + $0x30] sm:$0xff] %vm305_vm0, %v2609_v19  ;;  %313 = vst.msk [vmem:[#allocation2 + $0x38] sm:$0xff] %vm305_vm0, %v2609_v19  ;;  %p2537_p1 = scmp.lt.s32.totalorder %s3323_s5, %s2535_s10 }
  0x1b   : > { %950 = vmatprep.subr.bf16.mxu0 %v2608_v1  ;;  %2327 = vmatprep.subr.bf16.mxu1 %v2608_v1  ;;  %314 = vst.msk [vmem:[#allocation2 + $0x40] sm:$0xff] %vm305_vm0, %v2609_v19  ;;  %315 = vst.msk [vmem:[#allocation2 + $0x48] sm:$0xff] %vm305_vm0, %v2609_v19  ;;  %v2432_v20 = vld [vmem:[%s2720_s24] ss:$8 sps:$4 sm:$0xff]   ;;  %v2438_v22 = vld [vmem:[%s2720_s24 + $0x14] ss:$8 sps:$4 sm:$0xff]  }
  0x1c   : > { %316 = vst.msk [vmem:[#allocation2 + $0x50] sm:$0xff] %vm305_vm0, %v2609_v19  ;;  %317 = vst.msk [vmem:[#allocation2 + $0x58] sm:$0xff] %vm305_vm0, %v2609_v19  ;;  %v2435_v21 = vld [vmem:[%s2720_s24 + $0x100] ss:$8 sps:$4 sm:$0xff]   ;;  %v2440_v23 = vld [vmem:[%s2720_s24 + $0x114] ss:$8 sps:$4 sm:$0xff]  }
  0x1d   : > { %318 = vst.msk [vmem:[#allocation2 + $0x60] sm:$0xff] %vm305_vm0, %v2609_v19  ;;  %319 = vst.msk [vmem:[#allocation2 + $0x68] sm:$0xff] %vm305_vm0, %v2609_v19  ;;  %v2442_v24 = vld [vmem:[%s2720_s24 + $0x10] ss:$8 sps:$4 sm:$0xff]   ;;  %v2444_v26 = vld [vmem:[%s2720_s24 + $0x24] ss:$8 sps:$4 sm:$0xff]  }
  0x1e   : > { %951 = vmatpush1.bf16.msra.mxu0 %v2418_v3  ;;  %2343 = vmatpush1.bf16.msra.mxu1 %v2418_v3  ;;  %320 = vst.msk [vmem:[#allocation2 + $0x70] sm:$0xff] %vm305_vm0, %v2609_v19  ;;  %321 = vst.msk [vmem:[#allocation2 + $0x78] sm:$0xff] %vm305_vm0, %v2609_v19  ;;  %v2443_v25 = vld [vmem:[%s2720_s24 + $0x110] ss:$8 sps:$4 sm:$0xff]   ;;  %v2446_v27 = vld [vmem:[%s2720_s24 + $0x124] ss:$8 sps:$4 sm:$0xff]  }
  0x1f   : > { %952 = vmatprep.subr.bf16.mxu0 %v2608_v1  ;;  %2328 = vmatprep.subr.bf16.mxu1 %v2608_v1  ;;  %322 = vst.msk [vmem:[#allocation2 + $0x80] sm:$0xff] %vm305_vm0, %v2609_v19  ;;  %323 = vst.msk [vmem:[#allocation2 + $0x88] sm:$0xff] %vm305_vm0, %v2609_v19  ;;  %v2448_v28 = vld [vmem:[%s2720_s24 + $0x20] ss:$8 sps:$4 sm:$0xff]   ;;  %v2450_v30 = vld [vmem:[%s2720_s24 + $0x34] ss:$8 sps:$4 sm:$0xff]  }
  0x20   : > { %324 = vst.msk [vmem:[#allocation2 + $0x90] sm:$0xff] %vm305_vm0, %v2609_v19  ;;  %325 = vst.msk [vmem:[#allocation2 + $0x98] sm:$0xff] %vm305_vm0, %v2609_v19  ;;  %v2449_v29 = vld [vmem:[%s2720_s24 + $0x120] ss:$8 sps:$4 sm:$0xff]   ;;  %v2452_v31 = vld [vmem:[%s2720_s24 + $0x134] ss:$8 sps:$4 sm:$0xff]  }
  0x21   : > { %326 = vst.msk [vmem:[#allocation2 + $0xa0] sm:$0xff] %vm305_vm0, %v2609_v19  ;;  %327 = vst.msk [vmem:[#allocation2 + $0xa8] sm:$0xff] %vm305_vm0, %v2609_v19  ;;  %v2454_v32 = vld [vmem:[%s2720_s24 + $0x30] ss:$8 sps:$4 sm:$0xff]   ;;  %v2456_v34 = vld [vmem:[%s2720_s24 + $0x44] ss:$8 sps:$4 sm:$0xff]  }
  0x22   : > { %953 = vmatpush1.bf16.msra.mxu0 %v2419_v4  ;;  %2344 = vmatpush1.bf16.msra.mxu1 %v2419_v4  ;;  %328 = vst.msk [vmem:[#allocation2 + $0xb0] sm:$0xff] %vm305_vm0, %v2609_v19  ;;  %329 = vst.msk [vmem:[#allocation2 + $0xb8] sm:$0xff] %vm305_vm0, %v2609_v19  ;;  %v2455_v33 = vld [vmem:[%s2720_s24 + $0x130] ss:$8 sps:$4 sm:$0xff]   ;;  %v2458_v35 = vld [vmem:[%s2720_s24 + $0x144] ss:$8 sps:$4 sm:$0xff]  }
  0x23   : > { %954 = vmatprep.subr.bf16.mxu0 %v2608_v1  ;;  %2329 = vmatprep.subr.bf16.mxu1 %v2608_v1  ;;  %330 = vst.msk [vmem:[#allocation2 + $0xc0] sm:$0xff] %vm305_vm0, %v2609_v19  ;;  %331 = vst.msk [vmem:[#allocation2 + $0xc8] sm:$0xff] %vm305_vm0, %v2609_v19  ;;  %v2460_v36 = vld [vmem:[%s2720_s24 + $0x40] ss:$8 sps:$4 sm:$0xff]   ;;  %v2462_v38 = vld [vmem:[%s2720_s24 + $0x54] ss:$8 sps:$4 sm:$0xff]  }
  0x24   : > { %332 = vst.msk [vmem:[#allocation2 + $0xd0] sm:$0xff] %vm305_vm0, %v2609_v19  ;;  %333 = vst.msk [vmem:[#allocation2 + $0xd8] sm:$0xff] %vm305_vm0, %v2609_v19  ;;  %v2461_v37 = vld [vmem:[%s2720_s24 + $0x140] ss:$8 sps:$4 sm:$0xff]   ;;  %v2464_v39 = vld [vmem:[%s2720_s24 + $0x154] ss:$8 sps:$4 sm:$0xff]  }
  0x25   : > { %334 = vst.msk [vmem:[#allocation2 + $0xe0] sm:$0xff] %vm305_vm0, %v2609_v19  ;;  %335 = vst.msk [vmem:[#allocation2 + $0xe8] sm:$0xff] %vm305_vm0, %v2609_v19  ;;  %v2466_v40 = vld [vmem:[%s2720_s24 + $0x50] ss:$8 sps:$4 sm:$0xff]   ;;  %v2468_v42 = vld [vmem:[%s2720_s24 + $0x64] ss:$8 sps:$4 sm:$0xff]  }
  0x26   : > { %955 = vmatpush1.bf16.msra.mxu0 %v2420_v5  ;;  %2345 = vmatpush1.bf16.msra.mxu1 %v2420_v5  ;;  %336 = vst.msk [vmem:[#allocation2 + $0xf0] sm:$0xff] %vm305_vm0, %v2609_v19  ;;  %337 = vst.msk [vmem:[#allocation2 + $0xf8] sm:$0xff] %vm305_vm0, %v2609_v19  ;;  %v2467_v41 = vld [vmem:[%s2720_s24 + $0x150] ss:$8 sps:$4 sm:$0xff]   ;;  %v2470_v43 = vld [vmem:[%s2720_s24 + $0x164] ss:$8 sps:$4 sm:$0xff]  }
  0x27   : > { %956 = vmatprep.subr.bf16.mxu0 %v2608_v1  ;;  %2330 = vmatprep.subr.bf16.mxu1 %v2608_v1  ;;  %338 = vst.msk [vmem:[#allocation2 + $0x100] sm:$0xff] %vm305_vm0, %v2609_v19  ;;  %339 = vst.msk [vmem:[#allocation2 + $0x108] sm:$0xff] %vm305_vm0, %v2609_v19  ;;  %v2472_v44 = vld [vmem:[%s2720_s24 + $0x60] ss:$8 sps:$4 sm:$0xff]   ;;  %v2474_v46 = vld [vmem:[%s2720_s24 + $0x74] ss:$8 sps:$4 sm:$0xff]  }
  0x28   : > { %340 = vst.msk [vmem:[#allocation2 + $0x110] sm:$0xff] %vm305_vm0, %v2609_v19  ;;  %341 = vst.msk [vmem:[#allocation2 + $0x118] sm:$0xff] %vm305_vm0, %v2609_v19  ;;  %v2473_v45 = vld [vmem:[%s2720_s24 + $0x160] ss:$8 sps:$4 sm:$0xff]   ;;  %v2476_v47 = vld [vmem:[%s2720_s24 + $0x174] ss:$8 sps:$4 sm:$0xff]  }
  0x29   : > { %342 = vst.msk [vmem:[#allocation2 + $0x120] sm:$0xff] %vm305_vm0, %v2609_v19  ;;  %343 = vst.msk [vmem:[#allocation2 + $0x128] sm:$0xff] %vm305_vm0, %v2609_v19  ;;  %v2478_v48 = vld [vmem:[%s2720_s24 + $0x70] ss:$8 sps:$4 sm:$0xff]   ;;  %v2480_v50 = vld [vmem:[%s2720_s24 + $0x84] ss:$8 sps:$4 sm:$0xff]  }
  0x2a   : > { %957 = vmatpush1.bf16.msra.mxu0 %v2421_v7  ;;  %2346 = vmatpush1.bf16.msra.mxu1 %v2421_v7  ;;  %344 = vst.msk [vmem:[#allocation2 + $0x130] sm:$0xff] %vm305_vm0, %v2609_v19  ;;  %345 = vst.msk [vmem:[#allocation2 + $0x138] sm:$0xff] %vm305_vm0, %v2609_v19  ;;  %v2479_v49 = vld [vmem:[%s2720_s24 + $0x170] ss:$8 sps:$4 sm:$0xff]   ;;  %v2482_v51 = vld [vmem:[%s2720_s24 + $0x184] ss:$8 sps:$4 sm:$0xff]  }
  0x2b   : > { %958 = vmatprep.subr.bf16.mxu0 %v2608_v1  ;;  %2331 = vmatprep.subr.bf16.mxu1 %v2608_v1  ;;  %346 = vst.msk [vmem:[#allocation2 + $0x140] sm:$0xff] %vm305_vm0, %v2609_v19  ;;  %347 = vst.msk [vmem:[#allocation2 + $0x148] sm:$0xff] %vm305_vm0, %v2609_v19  ;;  %v2484_v52 = vld [vmem:[%s2720_s24 + $0x80] ss:$8 sps:$4 sm:$0xff]   ;;  %v2486_v54 = vld [vmem:[%s2720_s24 + $0x94] ss:$8 sps:$4 sm:$0xff]  }
  0x2c   : > { %348 = vst.msk [vmem:[#allocation2 + $0x150] sm:$0xff] %vm305_vm0, %v2609_v19  ;;  %349 = vst.msk [vmem:[#allocation2 + $0x158] sm:$0xff] %vm305_vm0, %v2609_v19  ;;  %v2485_v53 = vld [vmem:[%s2720_s24 + $0x180] ss:$8 sps:$4 sm:$0xff]   ;;  %v2488_v55 = vld [vmem:[%s2720_s24 + $0x194] ss:$8 sps:$4 sm:$0xff]  }
  0x2d   : > { %350 = vst.msk [vmem:[#allocation2 + $0x160] sm:$0xff] %vm305_vm0, %v2609_v19  ;;  %351 = vst.msk [vmem:[#allocation2 + $0x168] sm:$0xff] %vm305_vm0, %v2609_v19  ;;  %v2490_v56 = vld [vmem:[%s2720_s24 + $0x90] ss:$8 sps:$4 sm:$0xff]   ;;  %v2492_v58 = vld [vmem:[%s2720_s24 + $0xa4] ss:$8 sps:$4 sm:$0xff]  }
  0x2e   : > { %959 = vmatpush1.bf16.msra.mxu0 %v2422_v9  ;;  %2347 = vmatpush1.bf16.msra.mxu1 %v2422_v9  ;;  %352 = vst.msk [vmem:[#allocation2 + $0x170] sm:$0xff] %vm305_vm0, %v2609_v19  ;;  %353 = vst.msk [vmem:[#allocation2 + $0x178] sm:$0xff] %vm305_vm0, %v2609_v19  ;;  %v2491_v57 = vld [vmem:[%s2720_s24 + $0x190] ss:$8 sps:$4 sm:$0xff]   ;;  %v2494_v59 = vld [vmem:[%s2720_s24 + $0x1a4] ss:$8 sps:$4 sm:$0xff]  }
  0x2f   : > { %960 = vmatprep.subr.bf16.mxu0 %v2608_v1  ;;  %2332 = vmatprep.subr.bf16.mxu1 %v2608_v1  ;;  %354 = vst.msk [vmem:[#allocation2 + $0x180] sm:$0xff] %vm305_vm0, %v2609_v19  ;;  %355 = vst.msk [vmem:[#allocation2 + $0x188] sm:$0xff] %vm305_vm0, %v2609_v19  ;;  %v2496_v60 = vld [vmem:[%s2720_s24 + $0xa0] ss:$8 sps:$4 sm:$0xff]   ;;  %v2498_v62 = vld [vmem:[%s2720_s24 + $0xb4] ss:$8 sps:$4 sm:$0xff]  }
  0x30   : > { %356 = vst.msk [vmem:[#allocation2 + $0x190] sm:$0xff] %vm305_vm0, %v2609_v19  ;;  %357 = vst.msk [vmem:[#allocation2 + $0x198] sm:$0xff] %vm305_vm0, %v2609_v19  ;;  %v2497_v61 = vld [vmem:[%s2720_s24 + $0x1a0] ss:$8 sps:$4 sm:$0xff]   ;;  %v2500_v63 = vld [vmem:[%s2720_s24 + $0x1b4] ss:$8 sps:$4 sm:$0xff]  }
  0x31   : > { %358 = vst.msk [vmem:[#allocation2 + $0x1a0] sm:$0xff] %vm305_vm0, %v2609_v19  ;;  %359 = vst.msk [vmem:[#allocation2 + $0x1a8] sm:$0xff] %vm305_vm0, %v2609_v19  ;;  %v2502_v0 = vld [vmem:[%s2720_s24 + $0xb0] ss:$8 sps:$4 sm:$0xff]   ;;  %v2504_v2 = vld [vmem:[%s2720_s24 + $0xc4] ss:$8 sps:$4 sm:$0xff]  }
  0x32   : > { %961 = vmatpush1.bf16.msra.mxu0 %v2423_v10  ;;  %2348 = vmatpush1.bf16.msra.mxu1 %v2423_v10  ;;  %360 = vst.msk [vmem:[#allocation2 + $0x1b0] sm:$0xff] %vm305_vm0, %v2609_v19  ;;  %361 = vst.msk [vmem:[#allocation2 + $0x1b8] sm:$0xff] %vm305_vm0, %v2609_v19  ;;  %v2506_v3 = vld [vmem:[%s2720_s24 + $0x1c4] ss:$8 sps:$4 sm:$0xff]   ;;  %v2508_v4 = vld [vmem:[%s2720_s24 + $0xc0] ss:$8 sps:$4 sm:$0xff]  }
  0x33   : > { %962 = vmatprep.subr.bf16.mxu0 %v2608_v1  ;;  %2333 = vmatprep.subr.bf16.mxu1 %v2608_v1  ;;  %362 = vst.msk [vmem:[#allocation2 + $0x1c0] sm:$0xff] %vm305_vm0, %v2609_v19  ;;  %363 = vst.msk [vmem:[#allocation2 + $0x1c8] sm:$0xff] %vm305_vm0, %v2609_v19  ;;  %v2509_v5 = vld [vmem:[%s2720_s24 + $0x1c0] ss:$8 sps:$4 sm:$0xff]   ;;  %v2510_v6 = vld [vmem:[%s2720_s24 + $0xd4] ss:$8 sps:$4 sm:$0xff]  }
  0x34   : > { %364 = vst.msk [vmem:[#allocation2 + $0x1d0] sm:$0xff] %vm305_vm0, %v2609_v19  ;;  %365 = vst.msk [vmem:[#allocation2 + $0x1d8] sm:$0xff] %vm305_vm0, %v2609_v19  ;;  %v2512_v7 = vld [vmem:[%s2720_s24 + $0x1d4] ss:$8 sps:$4 sm:$0xff]   ;;  %v2514_v8 = vld [vmem:[%s2720_s24 + $0xd0] ss:$8 sps:$4 sm:$0xff]  }
  0x35   : > { %366 = vst.msk [vmem:[#allocation2 + $0x1e0] sm:$0xff] %vm305_vm0, %v2609_v19  ;;  %367 = vst.msk [vmem:[#allocation2 + $0x1e8] sm:$0xff] %vm305_vm0, %v2609_v19  ;;  %v2515_v9 = vld [vmem:[%s2720_s24 + $0x1d0] ss:$8 sps:$4 sm:$0xff]   ;;  %v2516_v10 = vld [vmem:[%s2720_s24 + $0xe4] ss:$8 sps:$4 sm:$0xff]  }
  0x36   : > { %963 = vmatpush2.bf16.msra.mxu0 %v2424_v11  ;;  %2349 = vmatpush2.bf16.msra.mxu1 %v2424_v11  ;;  %368 = vst.msk [vmem:[#allocation2 + $0x1f0] sm:$0xff] %vm305_vm0, %v2609_v19  ;;  %369 = vst.msk [vmem:[#allocation2 + $0x1f8] sm:$0xff] %vm305_vm0, %v2609_v19  ;;  %v2518_v11 = vld [vmem:[%s2720_s24 + $0x1e4] ss:$8 sps:$4 sm:$0xff]  }
  0x37   : > { %964 = vmatprep.subr.bf16.mxu0 %v2608_v1  ;;  %2334 = vmatprep.subr.bf16.mxu1 %v2608_v1  ;;  %v402_v19 = vld [vmem:[#allocation2 + $0x100] sm:$0xff] }
  0x3a   : > { %965 = vmatpush2.bf16.msra.mxu0 %v2425_v12  ;;  %2350 = vmatpush2.bf16.msra.mxu1 %v2425_v12  ;;  %v2520_v12 = vld [vmem:[%s2720_s24 + $0xe0] ss:$8 sps:$4 sm:$0xff]  }
  0x3b   : > { %966 = vmatprep.subr.bf16.mxu0 %v2608_v1  ;;  %2335 = vmatprep.subr.bf16.mxu1 %v2608_v1 }
  0x3e   : > { %967 = vmatpush2.bf16.msra.mxu0 %v2426_v13  ;;  %2351 = vmatpush2.bf16.msra.mxu1 %v2426_v13  ;;  %v2521_v13 = vld [vmem:[%s2720_s24 + $0x1e0] ss:$8 sps:$4 sm:$0xff]  }
  0x3f   : > { %968 = vmatprep.subr.bf16.mxu0 %v2608_v1  ;;  %2336 = vmatprep.subr.bf16.mxu1 %v2608_v1 }
  0x42   : > { %969 = vmatpush2.bf16.msra.mxu0 %v2427_v14  ;;  %2352 = vmatpush2.bf16.msra.mxu1 %v2427_v14  ;;  %v2522_v14 = vld [vmem:[%s2720_s24 + $0xf4] ss:$8 sps:$4 sm:$0xff]  }
  0x43   : > { %970 = vmatprep.subr.bf16.mxu0 %v2608_v1  ;;  %2337 = vmatprep.subr.bf16.mxu1 %v2608_v1 }
  0x46   : > { %971 = vmatpush2.bf16.msra.mxu0 %v2428_v15  ;;  %2353 = vmatpush2.bf16.msra.mxu1 %v2428_v15  ;;  %v2524_v15 = vld [vmem:[%s2720_s24 + $0x1f4] ss:$8 sps:$4 sm:$0xff]  }
  0x47   : > { %972 = vmatprep.subr.bf16.mxu0 %v2608_v1  ;;  %2338 = vmatprep.subr.bf16.mxu1 %v2608_v1 }
  0x4a   : > { %973 = vmatpush2.bf16.msra.mxu0 %v2429_v16  ;;  %2354 = vmatpush2.bf16.msra.mxu1 %v2429_v16  ;;  %v2526_v16 = vld [vmem:[%s2720_s24 + $0xf0] ss:$8 sps:$4 sm:$0xff]  }
  0x4b   : > { %974 = vmatprep.subr.bf16.mxu0 %v2608_v1  ;;  %2339 = vmatprep.subr.bf16.mxu1 %v2608_v1 }
  0x4e   : > { %975 = vmatpush2.bf16.msra.mxu0 %v2430_v17  ;;  %2355 = vmatpush2.bf16.msra.mxu1 %v2430_v17  ;;  %v2527_v17 = vld [vmem:[%s2720_s24 + $0x1f0] ss:$8 sps:$4 sm:$0xff]  }
  0x4f   : > { %976 = vmatprep.subr.bf16.mxu0 %v2608_v1  ;;  %2340 = vmatprep.subr.bf16.mxu1 %v2608_v1  ;;  %v2503_v1 = vld [vmem:[%s2720_s24 + $0x1b0] ss:$8 sps:$4 sm:$0xff]   ;;  %s2530_s24 = scalar_lea.vmem %s3323_s5, 4096 }
  0x50   : > { %p2531_p12 = scmp.ne.s32.totalorder %s3323_s5, %s2530_s24  ;;  %p2538_p2 = scmp.lt.s32.totalorder %s2536_s11, %s2530_s24 }
  0x52   : > { %977 = vmatpush2.bf16.msra.mxu0 %v2779_v18  ;;  %2356 = vmatpush2.bf16.msra.mxu1 %v2779_v18  ;;  %v370_v18 = vld [vmem:[#allocation2] sm:$0xff]  ;;  %p2532_p13 = pnand %p2531_p12, %p2678_p4  ;;  %p2539_p3 = por %p2538_p2, %p2537_p1 }
  0x54   : > { %p2533_p0 = pneg %p2532_p13 }
  0x55   : > { %979 = vmatmul.mubr.bf16.vlgmr.msra.gmra.mxu0 %v2432_v20  ;;  %1107 = vmatmul.mubr.bf16.vlgmr.msra.gmra.mxu1 %v2435_v21 }
  0x56   : > { %986 = vmatprep.mubr.bf16.mxu0 %v2438_v22  ;;  %1114 = vmatprep.mubr.bf16.mxu1 %v2440_v23  ;;  %p2540_p5 = pnand %p2539_p3, %p2533_p0 }
  0x5d   : > { %987 = vmatmul.mubr.bf16.gmra.mxu0 %v2442_v24  ;;  %1115 = vmatmul.mubr.bf16.gmra.mxu1 %v2443_v25 }
  0x5e   : > { %994 = vmatprep.mubr.bf16.mxu0 %v2444_v26  ;;  %1122 = vmatprep.mubr.bf16.mxu1 %v2446_v27  ;;  %v371_v26 = vld [vmem:[#allocation2 + $0x8] sm:$0xff] }
  0x5f   : > { %v403_v27 = vld [vmem:[#allocation2 + $0x108] sm:$0xff] }
  0x65   : > { %995 = vmatmul.mubr.bf16.gmra.mxu0 %v2448_v28  ;;  %1123 = vmatmul.mubr.bf16.gmra.mxu1 %v2449_v29 }
  0x66   : > { %1002 = vmatprep.mubr.bf16.mxu0 %v2450_v30  ;;  %1130 = vmatprep.mubr.bf16.mxu1 %v2452_v31 }
  0x6d   : > { %1003 = vmatmul.mubr.bf16.gmra.mxu0 %v2454_v32  ;;  %1131 = vmatmul.mubr.bf16.gmra.mxu1 %v2455_v33 }
  0x6e   : > { %1010 = vmatprep.mubr.bf16.mxu0 %v2456_v34  ;;  %1138 = vmatprep.mubr.bf16.mxu1 %v2458_v35  ;;  %v372_v34 = vld [vmem:[#allocation2 + $0x10] sm:$0xff] }
  0x6f   : > { %v404_v35 = vld [vmem:[#allocation2 + $0x110] sm:$0xff] }
  0x75   : > { %1011 = vmatmul.mubr.bf16.gmra.mxu0 %v2460_v36  ;;  %1139 = vmatmul.mubr.bf16.gmra.mxu1 %v2461_v37  ;;  %v2982_v36 = vld [vmem:[%s3378_s2] ss:$0 sm:$0xff] }
  0x76   : > { %1018 = vmatprep.mubr.bf16.mxu0 %v2462_v38  ;;  %1146 = vmatprep.mubr.bf16.mxu1 %v2464_v39  ;;  %v2987_v39 = vld [vmem:[%s3379_s3] ss:$0 sm:$0xff] }
  0x7d   : > { %1019 = vmatmul.mubr.bf16.gmra.mxu0 %v2466_v40  ;;  %1147 = vmatmul.mubr.bf16.gmra.mxu1 %v2467_v41 }
  0x7e   : > { %1026 = vmatprep.mubr.bf16.mxu0 %v2468_v42  ;;  %1154 = vmatprep.mubr.bf16.mxu1 %v2470_v43  ;;  %v373_v42 = vld [vmem:[#allocation2 + $0x18] sm:$0xff] }
  0x85   : > { %1027 = vmatmul.mubr.bf16.gmra.mxu0 %v2472_v44  ;;  %1155 = vmatmul.mubr.bf16.gmra.mxu1 %v2473_v45 }
  0x86   : > { %1034 = vmatprep.mubr.bf16.mxu0 %v2474_v46  ;;  %1162 = vmatprep.mubr.bf16.mxu1 %v2476_v47  ;;  %v405_v47 = vld [vmem:[#allocation2 + $0x118] sm:$0xff] }
  0x8d   : > { %1035 = vmatmul.mubr.bf16.gmra.mxu0 %v2478_v48  ;;  %1163 = vmatmul.mubr.bf16.gmra.mxu1 %v2479_v49 }
  0x8e   : > { %1042 = vmatprep.mubr.bf16.mxu0 %v2480_v50  ;;  %1170 = vmatprep.mubr.bf16.mxu1 %v2482_v51 }
  0x95   : > { %1043 = vmatmul.mubr.bf16.gmra.mxu0 %v2484_v52  ;;  %1171 = vmatmul.mubr.bf16.gmra.mxu1 %v2485_v53 }
  0x96   : > { %1050 = vmatprep.mubr.bf16.mxu0 %v2486_v54  ;;  %1178 = vmatprep.mubr.bf16.mxu1 %v2488_v55 }
  0x9d   : > { %1051 = vmatmul.mubr.bf16.gmra.mxu0 %v2490_v56  ;;  %1179 = vmatmul.mubr.bf16.gmra.mxu1 %v2491_v57 }
  0x9e   : > { %1058 = vmatprep.mubr.bf16.mxu0 %v2492_v58  ;;  %1186 = vmatprep.mubr.bf16.mxu1 %v2494_v59 }
  0xa5   : > { %1059 = vmatmul.mubr.bf16.gmra.mxu0 %v2496_v60  ;;  %1187 = vmatmul.mubr.bf16.gmra.mxu1 %v2497_v61 }
  0xa6   : > { %1066 = vmatprep.mubr.bf16.mxu0 %v2498_v62  ;;  %1194 = vmatprep.mubr.bf16.mxu1 %v2500_v63 }
  0xad   : > { %1067 = vmatmul.mubr.bf16.gmra.mxu0 %v2502_v0  ;;  %1195 = vmatmul.mubr.bf16.gmra.mxu1 %v2503_v1  ;;  %v374_v0 = vld [vmem:[#allocation2 + $0x20] sm:$0xff] }
  0xae   : > { %1074 = vmatprep.mubr.bf16.mxu0 %v2504_v2  ;;  %1202 = vmatprep.mubr.bf16.mxu1 %v2506_v3  ;;  %v406_v1 = vld [vmem:[#allocation2 + $0x120] sm:$0xff] }
  0xb5   : > { %1075 = vmatmul.mubr.bf16.gmra.mxu0 %v2508_v4  ;;  %1203 = vmatmul.mubr.bf16.gmra.mxu1 %v2509_v5 }
  0xb6   : > { %1082 = vmatprep.mubr.bf16.mxu0 %v2510_v6  ;;  %1210 = vmatprep.mubr.bf16.mxu1 %v2512_v7 }
  0xbd   : > { %1083 = vmatmul.mubr.bf16.gmra.mxu0 %v2514_v8  ;;  %1211 = vmatmul.mubr.bf16.gmra.mxu1 %v2515_v9 }
  0xbe   : > { %1090 = vmatprep.mubr.bf16.mxu0 %v2516_v10  ;;  %1218 = vmatprep.mubr.bf16.mxu1 %v2518_v11 }
  0xc5   : > { %1091 = vmatmul.mubr.bf16.gmra.mxu0 %v2520_v12  ;;  %1219 = vmatmul.mubr.bf16.gmra.mxu1 %v2521_v13 }
  0xc6   : > { %1098 = vmatprep.mubr.bf16.mxu0 %v2522_v14  ;;  %1226 = vmatprep.mubr.bf16.mxu1 %v2524_v15 }
  0xcd   : > { %1099 = vmatmul.mubr.bf16.gmra.mxu0 %v2526_v16  ;;  %1227 = vmatmul.mubr.bf16.gmra.mxu1 %v2527_v17 }
 0x115   : > { %v980_v20 = vpop.f32.mrf.mxu0  ;;  %v1108_v21 = vpop.f32.mrf.mxu1 }
 0x116   : > { %v1235_v22 = vadd.f32 %v980_v20, %v370_v18  ;;  %v1267_v23 = vadd.f32 %v1108_v21, %v402_v19  ;;  %v375_v18 = vld [vmem:[#allocation2 + $0x28] sm:$0xff] }
 0x117   : > { %v982_v24 = vpop.f32.mrf.mxu0  ;;  %v1110_v25 = vpop.f32.mrf.mxu1  ;;  %v407_v19 = vld [vmem:[#allocation2 + $0x128] sm:$0xff] }
 0x118   : > { %1300 = vst.msk [vmem:[#allocation2] sm:$0xff] %vm305_vm0, %v1235_v22  ;;  %1332 = vst.msk [vmem:[#allocation2 + $0x100] sm:$0xff] %vm305_vm0, %v1267_v23 }
 0x119   : > { %v983_v28 = vpop.f32.mrf.mxu0  ;;  %v1111_v29 = vpop.f32.mrf.mxu1 }
 0x11a   : > { %v1236_v30 = vadd.f32 %v983_v28, %v371_v26  ;;  %v1268_v31 = vadd.f32 %v1111_v29, %v403_v27 }
 0x11b   : > { %v985_v32 = vpop.f32.mrf.mxu0  ;;  %v1113_v33 = vpop.f32.mrf.mxu1 }
 0x11c   : > { %1301 = vst.msk [vmem:[#allocation2 + $0x8] sm:$0xff] %vm305_vm0, %v1236_v30  ;;  %1333 = vst.msk [vmem:[#allocation2 + $0x108] sm:$0xff] %vm305_vm0, %v1268_v31 }
 0x11d   : > { %v988_v37 = vpop.f32.mrf.mxu0  ;;  %v1116_v38 = vpop.f32.mrf.mxu1 }
 0x11e   : > { %v1237_v40 = vadd.f32 %v988_v37, %v372_v34  ;;  %v1269_v41 = vadd.f32 %v1116_v38, %v404_v35  ;;  %v376_v37 = vld [vmem:[#allocation2 + $0x30] sm:$0xff] }
 0x11f   : > { %v1367_v43 = vld [vmem:[#allocation2] sm:$0xff]  ;;  %v990_v45 = vpop.f32.mrf.mxu0  ;;  %v1118_v46 = vpop.f32.mrf.mxu1  ;;  %v408_v38 = vld [vmem:[#allocation2 + $0x130] sm:$0xff] }
 0x120   : > { %v1399_v44 = vld [vmem:[#allocation2 + $0x100] sm:$0xff]  ;;  %v1438_v48 = vmul.f32 %v2982_v36, %v1367_v43  ;;  %1302 = vst.msk [vmem:[#allocation2 + $0x10] sm:$0xff] %vm305_vm0, %v1237_v40  ;;  %1334 = vst.msk [vmem:[#allocation2 + $0x110] sm:$0xff] %vm305_vm0, %v1269_v41 }
 0x121   : > { %v1470_v49 = vmul.f32 %v2982_v36, %v1399_v44  ;;  %v991_v50 = vpop.f32.mrf.mxu0  ;;  %v1119_v51 = vpop.f32.mrf.mxu1 }
 0x122   : > { %v1509_v52 = vadd.f32 %v2987_v39, %v1438_v48  ;;  %v1238_v54 = vadd.f32 %v991_v50, %v373_v42  ;;  %v1270_v55 = vadd.f32 %v1119_v51, %v405_v47  ;;  %v377_v50 = vld [vmem:[#allocation2 + $0x38] sm:$0xff] }
 0x123   : > { %v1541_v53 = vadd.f32 %v2987_v39, %v1470_v49  ;;  %v1368_v56 = vld [vmem:[#allocation2 + $0x8] sm:$0xff]  ;;  %v993_v58 = vpop.f32.mrf.mxu0  ;;  %v1121_v59 = vpop.f32.mrf.mxu1  ;;  %v409_v51 = vld [vmem:[#allocation2 + $0x138] sm:$0xff] }
 0x124   : > { %v1400_v57 = vld [vmem:[#allocation2 + $0x108] sm:$0xff]  ;;  %v1573_v60 = vmax.f32 %v1509_v52, 0.0  ;;  %v1439_v62 = vmul.f32 %v2982_v36, %v1368_v56  ;;  %1303 = vst.msk [vmem:[#allocation2 + $0x18] sm:$0xff] %vm305_vm0, %v1238_v54  ;;  %1335 = vst.msk [vmem:[#allocation2 + $0x118] sm:$0xff] %vm305_vm0, %v1270_v55 }
 0x125   : > { %v1605_v61 = vmax.f32 %v1541_v53, 0.0  ;;  %v1471_v63 = vmul.f32 %v2982_v36, %v1400_v57  ;;  %v996_v2 = vpop.f32.mrf.mxu0  ;;  %v1124_v3 = vpop.f32.mrf.mxu1 }
 0x126   : > { %v2260_v4 = vpack.c.bf16 %v1573_v60, %v1573_v60  ;;  %v1510_v6 = vadd.f32 %v2987_v39, %v1439_v62  ;;  %v1239_v10 = vadd.f32 %v996_v2, %v374_v0  ;;  %v1271_v11 = vadd.f32 %v1124_v3, %v406_v1 }
 0x127   : > { %v2292_v5 = vpack.c.bf16 %v1605_v61, %v1605_v61  ;;  %v1542_v7 = vadd.f32 %v2987_v39, %v1471_v63  ;;  %v1369_v8 = vld [vmem:[#allocation2 + $0x10] sm:$0xff]  ;;  %v998_v12 = vpop.f32.mrf.mxu0  ;;  %v1126_v13 = vpop.f32.mrf.mxu1 }
 0x128   : > { %v1401_v9 = vld [vmem:[#allocation2 + $0x110] sm:$0xff]  ;;  %1894 = vst.msk [vmem:[%s3004_s14] sm:$0xf] %vm1893_vm1, %v2260_v4  ;;  %v1574_v14 = vmax.f32 %v1510_v6, 0.0  ;;  %v1440_v16 = vmul.f32 %v2982_v36, %v1369_v8  ;;  %v378_v4 = vld [vmem:[#allocation2 + $0x40] sm:$0xff] }
 0x129   : > { %1926 = vst.msk [vmem:[%s3004_s14 + $0x80] sm:$0xf] %vm1893_vm1, %v2292_v5  ;;  %v1606_v15 = vmax.f32 %v1542_v7, 0.0  ;;  %v1472_v17 = vmul.f32 %v2982_v36, %v1401_v9  ;;  %v999_v20 = vpop.f32.mrf.mxu0  ;;  %v1127_v21 = vpop.f32.mrf.mxu1  ;;  %v410_v5 = vld [vmem:[#allocation2 + $0x140] sm:$0xff] }
 0x12a   : > { %1304 = vst.msk [vmem:[#allocation2 + $0x20] sm:$0xff] %vm305_vm0, %v1239_v10  ;;  %1336 = vst.msk [vmem:[#allocation2 + $0x120] sm:$0xff] %vm305_vm0, %v1271_v11  ;;  %v2261_v22 = vpack.c.bf16 %v1574_v14, %v1574_v14  ;;  %v1511_v24 = vadd.f32 %v2987_v39, %v1440_v16  ;;  %v1240_v28 = vadd.f32 %v999_v20, %v375_v18 }
 0x12b   : > { %v2293_v23 = vpack.c.bf16 %v1606_v15, %v1606_v15  ;;  %v1543_v25 = vadd.f32 %v2987_v39, %v1472_v17  ;;  %v1370_v26 = vld [vmem:[#allocation2 + $0x18] sm:$0xff]  ;;  %v1272_v29 = vadd.f32 %v1127_v21, %v407_v19  ;;  %v1001_v30 = vpop.f32.mrf.mxu0  ;;  %v1129_v31 = vpop.f32.mrf.mxu1 }
 0x12c   : > { %v1402_v27 = vld [vmem:[#allocation2 + $0x118] sm:$0xff]  ;;  %1895 = vst.msk [vmem:[%s3004_s14 + $0x4] sm:$0xf] %vm1893_vm1, %v2261_v22  ;;  %v1575_v32 = vmax.f32 %v1511_v24, 0.0  ;;  %v1441_v34 = vmul.f32 %v2982_v36, %v1370_v26  ;;  %v379_v22 = vld [vmem:[#allocation2 + $0x48] sm:$0xff] }
 0x12d   : > { %1927 = vst.msk [vmem:[%s3004_s14 + $0x84] sm:$0xf] %vm1893_vm1, %v2293_v23  ;;  %v1607_v33 = vmax.f32 %v1543_v25, 0.0  ;;  %v1473_v35 = vmul.f32 %v2982_v36, %v1402_v27  ;;  %v1004_v40 = vpop.f32.mrf.mxu0  ;;  %v1132_v41 = vpop.f32.mrf.mxu1  ;;  %v411_v23 = vld [vmem:[#allocation2 + $0x148] sm:$0xff] }
 0x12e   : > { %1305 = vst.msk [vmem:[#allocation2 + $0x28] sm:$0xff] %vm305_vm0, %v1240_v28  ;;  %1337 = vst.msk [vmem:[#allocation2 + $0x128] sm:$0xff] %vm305_vm0, %v1272_v29  ;;  %v2262_v42 = vpack.c.bf16 %v1575_v32, %v1575_v32  ;;  %v1512_v44 = vadd.f32 %v2987_v39, %v1441_v34  ;;  %v1241_v46 = vadd.f32 %v1004_v40, %v376_v37  ;;  %v380_v34 = vld [vmem:[#allocation2 + $0x50] sm:$0xff] }
 0x12f   : > { %v2294_v43 = vpack.c.bf16 %v1607_v33, %v1607_v33  ;;  %v1544_v45 = vadd.f32 %v2987_v39, %v1473_v35  ;;  %v1273_v47 = vadd.f32 %v1132_v41, %v408_v38  ;;  %v1006_v48 = vpop.f32.mrf.mxu0  ;;  %v1134_v49 = vpop.f32.mrf.mxu1 }
 0x130   : > { %1896 = vst.msk [vmem:[%s3004_s14 + $0x8] sm:$0xf] %vm1893_vm1, %v2262_v42  ;;  %v1576_v52 = vmax.f32 %v1512_v44, 0.0 }
 0x131   : > { %1928 = vst.msk [vmem:[%s3004_s14 + $0x88] sm:$0xf] %vm1893_vm1, %v2294_v43  ;;  %v1608_v53 = vmax.f32 %v1544_v45, 0.0  ;;  %v1371_v54 = vld [vmem:[#allocation2 + $0x20] sm:$0xff]  ;;  %v1007_v58 = vpop.f32.mrf.mxu0  ;;  %v1135_v59 = vpop.f32.mrf.mxu1  ;;  %v412_v45 = vld [vmem:[#allocation2 + $0x150] sm:$0xff] }
 0x132   : > { %v1403_v55 = vld [vmem:[#allocation2 + $0x120] sm:$0xff]  ;;  %v1442_v56 = vmul.f32 %v2982_v36, %v1371_v54  ;;  %1306 = vst.msk [vmem:[#allocation2 + $0x30] sm:$0xff] %vm305_vm0, %v1241_v46  ;;  %1338 = vst.msk [vmem:[#allocation2 + $0x130] sm:$0xff] %vm305_vm0, %v1273_v47  ;;  %v2263_v60 = vpack.c.bf16 %v1576_v52, %v1576_v52  ;;  %v1242_v62 = vadd.f32 %v1007_v58, %v377_v50 }
 0x133   : > { %v1474_v57 = vmul.f32 %v2982_v36, %v1403_v55  ;;  %v2295_v61 = vpack.c.bf16 %v1608_v53, %v1608_v53  ;;  %v1274_v63 = vadd.f32 %v1135_v59, %v409_v51  ;;  %v1009_v2 = vpop.f32.mrf.mxu0  ;;  %v1137_v3 = vpop.f32.mrf.mxu1 }
 0x134   : > { %v1513_v0 = vadd.f32 %v2987_v39, %v1442_v56  ;;  %1897 = vst.msk [vmem:[%s3004_s14 + $0xc] sm:$0xf] %vm1893_vm1, %v2263_v60  ;;  %v381_v2 = vld [vmem:[#allocation2 + $0x58] sm:$0xff] }
 0x135   : > { %v1545_v1 = vadd.f32 %v2987_v39, %v1474_v57  ;;  %1929 = vst.msk [vmem:[%s3004_s14 + $0x8c] sm:$0xf] %vm1893_vm1, %v2295_v61  ;;  %v1372_v6 = vld [vmem:[#allocation2 + $0x28] sm:$0xff]  ;;  %v1012_v12 = vpop.f32.mrf.mxu0  ;;  %v1140_v13 = vpop.f32.mrf.mxu1  ;;  %v413_v3 = vld [vmem:[#allocation2 + $0x158] sm:$0xff] }
 0x136   : > { %v1404_v7 = vld [vmem:[#allocation2 + $0x128] sm:$0xff]  ;;  %1307 = vst.msk [vmem:[#allocation2 + $0x38] sm:$0xff] %vm305_vm0, %v1242_v62  ;;  %1339 = vst.msk [vmem:[#allocation2 + $0x138] sm:$0xff] %vm305_vm0, %v1274_v63  ;;  %v1577_v8 = vmax.f32 %v1513_v0, 0.0  ;;  %v1443_v10 = vmul.f32 %v2982_v36, %v1372_v6  ;;  %v1243_v14 = vadd.f32 %v1012_v12, %v378_v4  ;;  %v1275_v15 = vadd.f32 %v1140_v13, %v410_v5 }
 0x137   : > { %v1609_v9 = vmax.f32 %v1545_v1, 0.0  ;;  %v1475_v11 = vmul.f32 %v2982_v36, %v1404_v7  ;;  %v1014_v20 = vpop.f32.mrf.mxu0  ;;  %v1142_v21 = vpop.f32.mrf.mxu1 }
 0x138   : > { %v2264_v16 = vpack.c.bf16 %v1577_v8, %v1577_v8  ;;  %v1514_v18 = vadd.f32 %v2987_v39, %v1443_v10  ;;  %1308 = vst.msk [vmem:[#allocation2 + $0x40] sm:$0xff] %vm305_vm0, %v1243_v14  ;;  %1340 = vst.msk [vmem:[#allocation2 + $0x140] sm:$0xff] %vm305_vm0, %v1275_v15  ;;  %v382_v20 = vld [vmem:[#allocation2 + $0x60] sm:$0xff] }
 0x139   : > { %v2296_v17 = vpack.c.bf16 %v1609_v9, %v1609_v9  ;;  %v1546_v19 = vadd.f32 %v2987_v39, %v1475_v11  ;;  %v1373_v24 = vld [vmem:[#allocation2 + $0x30] sm:$0xff]  ;;  %v1015_v30 = vpop.f32.mrf.mxu0  ;;  %v1143_v31 = vpop.f32.mrf.mxu1  ;;  %v414_v21 = vld [vmem:[#allocation2 + $0x160] sm:$0xff] }
 0x13a   : > { %v1405_v25 = vld [vmem:[#allocation2 + $0x130] sm:$0xff]  ;;  %1898 = vst.msk [vmem:[%s3004_s14 + $0x10] sm:$0xf] %vm1893_vm1, %v2264_v16  ;;  %v1578_v26 = vmax.f32 %v1514_v18, 0.0  ;;  %v1444_v28 = vmul.f32 %v2982_v36, %v1373_v24  ;;  %v1244_v32 = vadd.f32 %v1015_v30, %v379_v22  ;;  %v1276_v33 = vadd.f32 %v1143_v31, %v411_v23 }
 0x13b   : > { %1930 = vst.msk [vmem:[%s3004_s14 + $0x90] sm:$0xf] %vm1893_vm1, %v2296_v17  ;;  %v1610_v27 = vmax.f32 %v1546_v19, 0.0  ;;  %v1476_v29 = vmul.f32 %v2982_v36, %v1405_v25  ;;  %v1017_v43 = vpop.f32.mrf.mxu0  ;;  %v1145_v44 = vpop.f32.mrf.mxu1 }
 0x13c   : > { %v2265_v35 = vpack.c.bf16 %v1578_v26, %v1578_v26  ;;  %v1515_v38 = vadd.f32 %v2987_v39, %v1444_v28  ;;  %1309 = vst.msk [vmem:[#allocation2 + $0x48] sm:$0xff] %vm305_vm0, %v1244_v32  ;;  %1341 = vst.msk [vmem:[#allocation2 + $0x148] sm:$0xff] %vm305_vm0, %v1276_v33 }
 0x13d   : > { %v2297_v37 = vpack.c.bf16 %v1610_v27, %v1610_v27  ;;  %v1547_v40 = vadd.f32 %v2987_v39, %v1476_v29  ;;  %v1374_v41 = vld [vmem:[#allocation2 + $0x38] sm:$0xff]  ;;  %v1020_v50 = vpop.f32.mrf.mxu0  ;;  %v1148_v51 = vpop.f32.mrf.mxu1 }
 0x13e   : > { %v1406_v42 = vld [vmem:[#allocation2 + $0x138] sm:$0xff]  ;;  %v1445_v46 = vmul.f32 %v2982_v36, %v1374_v41  ;;  %1899 = vst.msk [vmem:[%s3004_s14 + $0x14] sm:$0xf] %vm1893_vm1, %v2265_v35  ;;  %v1579_v48 = vmax.f32 %v1515_v38, 0.0  ;;  %v1245_v54 = vadd.f32 %v1020_v50, %v380_v34  ;;  %v1277_v55 = vadd.f32 %v1148_v51, %v412_v45  ;;  %v415_v41 = vld [vmem:[#allocation2 + $0x168] sm:$0xff] }
 0x13f   : > { %v1477_v47 = vmul.f32 %v2982_v36, %v1406_v42  ;;  %1931 = vst.msk [vmem:[%s3004_s14 + $0x94] sm:$0xf] %vm1893_vm1, %v2297_v37  ;;  %v1611_v49 = vmax.f32 %v1547_v40, 0.0  ;;  %v1375_v58 = vld [vmem:[#allocation2 + $0x40] sm:$0xff]  ;;  %v1022_v60 = vpop.f32.mrf.mxu0  ;;  %v1150_v61 = vpop.f32.mrf.mxu1  ;;  %v383_v40 = vld [vmem:[#allocation2 + $0x68] sm:$0xff] }
 0x140   : > { %v1516_v52 = vadd.f32 %v2987_v39, %v1445_v46  ;;  %v2266_v56 = vpack.c.bf16 %v1579_v48, %v1579_v48  ;;  %v1407_v59 = vld [vmem:[#allocation2 + $0x140] sm:$0xff]  ;;  %v1446_v0 = vmul.f32 %v2982_v36, %v1375_v58  ;;  %1310 = vst.msk [vmem:[#allocation2 + $0x50] sm:$0xff] %vm305_vm0, %v1245_v54  ;;  %1342 = vst.msk [vmem:[#allocation2 + $0x150] sm:$0xff] %vm305_vm0, %v1277_v55 }
 0x141   : > { %v1548_v53 = vadd.f32 %v2987_v39, %v1477_v47  ;;  %v2298_v57 = vpack.c.bf16 %v1611_v49, %v1611_v49  ;;  %v1478_v1 = vmul.f32 %v2982_v36, %v1407_v59  ;;  %v1023_v4 = vpop.f32.mrf.mxu0  ;;  %v1151_v5 = vpop.f32.mrf.mxu1 }
 0x142   : > { %v1580_v62 = vmax.f32 %v1516_v52, 0.0  ;;  %1900 = vst.msk [vmem:[%s3004_s14 + $0x18] sm:$0xf] %vm1893_vm1, %v2266_v56  ;;  %v1517_v8 = vadd.f32 %v2987_v39, %v1446_v0  ;;  %v1246_v12 = vadd.f32 %v1023_v4, %v381_v2  ;;  %v1278_v13 = vadd.f32 %v1151_v5, %v413_v3  ;;  %v384_v52 = vld [vmem:[#allocation2 + $0x70] sm:$0xff] }
 0x143   : > { %v1612_v63 = vmax.f32 %v1548_v53, 0.0  ;;  %1932 = vst.msk [vmem:[%s3004_s14 + $0x98] sm:$0xf] %vm1893_vm1, %v2298_v57  ;;  %v1549_v9 = vadd.f32 %v2987_v39, %v1478_v1  ;;  %v1376_v10 = vld [vmem:[#allocation2 + $0x48] sm:$0xff]  ;;  %v1025_v14 = vpop.f32.mrf.mxu0  ;;  %v1153_v15 = vpop.f32.mrf.mxu1  ;;  %v416_v53 = vld [vmem:[#allocation2 + $0x170] sm:$0xff] }
 0x144   : > { %v2267_v6 = vpack.c.bf16 %v1580_v62, %v1580_v62  ;;  %v1408_v11 = vld [vmem:[#allocation2 + $0x148] sm:$0xff]  ;;  %v1581_v16 = vmax.f32 %v1517_v8, 0.0  ;;  %v1447_v18 = vmul.f32 %v2982_v36, %v1376_v10  ;;  %1311 = vst.msk [vmem:[#allocation2 + $0x58] sm:$0xff] %vm305_vm0, %v1246_v12  ;;  %1343 = vst.msk [vmem:[#allocation2 + $0x158] sm:$0xff] %vm305_vm0, %v1278_v13 }
 0x145   : > { %v2299_v7 = vpack.c.bf16 %v1612_v63, %v1612_v63  ;;  %v1613_v17 = vmax.f32 %v1549_v9, 0.0  ;;  %v1479_v19 = vmul.f32 %v2982_v36, %v1408_v11  ;;  %v1028_v22 = vpop.f32.mrf.mxu0  ;;  %v1156_v23 = vpop.f32.mrf.mxu1 }
 0x146   : > { %1901 = vst.msk [vmem:[%s3004_s14 + $0x1c] sm:$0xf] %vm1893_vm1, %v2267_v6  ;;  %v2268_v24 = vpack.c.bf16 %v1581_v16, %v1581_v16  ;;  %v1518_v26 = vadd.f32 %v2987_v39, %v1447_v18  ;;  %v1247_v30 = vadd.f32 %v1028_v22, %v382_v20  ;;  %v1279_v31 = vadd.f32 %v1156_v23, %v414_v21  ;;  %v385_v6 = vld [vmem:[#allocation2 + $0x78] sm:$0xff] }
 0x147   : > { %1933 = vst.msk [vmem:[%s3004_s14 + $0x9c] sm:$0xf] %vm1893_vm1, %v2299_v7  ;;  %v2300_v25 = vpack.c.bf16 %v1613_v17, %v1613_v17  ;;  %v1550_v27 = vadd.f32 %v2987_v39, %v1479_v19  ;;  %v1377_v28 = vld [vmem:[#allocation2 + $0x50] sm:$0xff]  ;;  %v1030_v32 = vpop.f32.mrf.mxu0  ;;  %v1158_v33 = vpop.f32.mrf.mxu1  ;;  %v417_v7 = vld [vmem:[#allocation2 + $0x178] sm:$0xff] }
 0x148   : > { %v1409_v29 = vld [vmem:[#allocation2 + $0x150] sm:$0xff]  ;;  %1902 = vst.msk [vmem:[%s3004_s14 + $0x20] sm:$0xf] %vm1893_vm1, %v2268_v24  ;;  %v1582_v34 = vmax.f32 %v1518_v26, 0.0  ;;  %v1448_v37 = vmul.f32 %v2982_v36, %v1377_v28  ;;  %v386_v24 = vld [vmem:[#allocation2 + $0x80] sm:$0xff] }
 0x149   : > { %1934 = vst.msk [vmem:[%s3004_s14 + $0xa0] sm:$0xf] %vm1893_vm1, %v2300_v25  ;;  %v1614_v35 = vmax.f32 %v1550_v27, 0.0  ;;  %v1480_v38 = vmul.f32 %v2982_v36, %v1409_v29  ;;  %v1031_v42 = vpop.f32.mrf.mxu0  ;;  %v1159_v43 = vpop.f32.mrf.mxu1  ;;  %v418_v25 = vld [vmem:[#allocation2 + $0x180] sm:$0xff] }
 0x14a   : > { %1312 = vst.msk [vmem:[#allocation2 + $0x60] sm:$0xff] %vm305_vm0, %v1247_v30  ;;  %1344 = vst.msk [vmem:[#allocation2 + $0x160] sm:$0xff] %vm305_vm0, %v1279_v31  ;;  %v2269_v44 = vpack.c.bf16 %v1582_v34, %v1582_v34  ;;  %v1519_v46 = vadd.f32 %v2987_v39, %v1448_v37  ;;  %v1248_v48 = vadd.f32 %v1031_v42, %v383_v40  ;;  %v387_v37 = vld [vmem:[#allocation2 + $0x88] sm:$0xff] }
 0x14b   : > { %v2301_v45 = vpack.c.bf16 %v1614_v35, %v1614_v35  ;;  %v1551_v47 = vadd.f32 %v2987_v39, %v1480_v38  ;;  %v1280_v49 = vadd.f32 %v1159_v43, %v415_v41  ;;  %v1033_v50 = vpop.f32.mrf.mxu0  ;;  %v1161_v51 = vpop.f32.mrf.mxu1  ;;  %v1378_v56 = vld [vmem:[#allocation2 + $0x58] sm:$0xff] }
 0x14c   : > { %1903 = vst.msk [vmem:[%s3004_s14 + $0x24] sm:$0xf] %vm1893_vm1, %v2269_v44  ;;  %v1583_v54 = vmax.f32 %v1519_v46, 0.0  ;;  %v1410_v57 = vld [vmem:[#allocation2 + $0x158] sm:$0xff]  ;;  %v1449_v58 = vmul.f32 %v2982_v36, %v1378_v56 }
 0x14d   : > { %1935 = vst.msk [vmem:[%s3004_s14 + $0xa4] sm:$0xf] %vm1893_vm1, %v2301_v45  ;;  %v1615_v55 = vmax.f32 %v1551_v47, 0.0  ;;  %v1481_v59 = vmul.f32 %v2982_v36, %v1410_v57  ;;  %v1036_v60 = vpop.f32.mrf.mxu0  ;;  %v1164_v61 = vpop.f32.mrf.mxu1  ;;  %v419_v47 = vld [vmem:[#allocation2 + $0x188] sm:$0xff] }
 0x14e   : > { %1313 = vst.msk [vmem:[#allocation2 + $0x68] sm:$0xff] %vm305_vm0, %v1248_v48  ;;  %1345 = vst.msk [vmem:[#allocation2 + $0x168] sm:$0xff] %vm305_vm0, %v1280_v49  ;;  %v2270_v62 = vpack.c.bf16 %v1583_v54, %v1583_v54  ;;  %v1249_v0 = vadd.f32 %v1036_v60, %v384_v52  ;;  %v1281_v1 = vadd.f32 %v1164_v61, %v416_v53 }
 0x14f   : > { %v2302_v63 = vpack.c.bf16 %v1615_v55, %v1615_v55  ;;  %v1520_v2 = vadd.f32 %v2987_v39, %v1449_v58  ;;  %v1552_v3 = vadd.f32 %v2987_v39, %v1481_v59  ;;  %v1038_v4 = vpop.f32.mrf.mxu0  ;;  %v1166_v5 = vpop.f32.mrf.mxu1 }
 0x150   : > { %1904 = vst.msk [vmem:[%s3004_s14 + $0x28] sm:$0xf] %vm1893_vm1, %v2270_v62  ;;  %v388_v4 = vld [vmem:[#allocation2 + $0x90] sm:$0xff] }
 0x151   : > { %1936 = vst.msk [vmem:[%s3004_s14 + $0xa8] sm:$0xf] %vm1893_vm1, %v2302_v63  ;;  %v1379_v8 = vld [vmem:[#allocation2 + $0x60] sm:$0xff]  ;;  %v1584_v10 = vmax.f32 %v1520_v2, 0.0  ;;  %v1616_v11 = vmax.f32 %v1552_v3, 0.0  ;;  %v1039_v14 = vpop.f32.mrf.mxu0  ;;  %v1167_v15 = vpop.f32.mrf.mxu1  ;;  %v420_v5 = vld [vmem:[#allocation2 + $0x190] sm:$0xff] }
 0x152   : > { %v1411_v9 = vld [vmem:[#allocation2 + $0x160] sm:$0xff]  ;;  %1314 = vst.msk [vmem:[#allocation2 + $0x70] sm:$0xff] %vm305_vm0, %v1249_v0  ;;  %1346 = vst.msk [vmem:[#allocation2 + $0x170] sm:$0xff] %vm305_vm0, %v1281_v1  ;;  %v1450_v12 = vmul.f32 %v2982_v36, %v1379_v8  ;;  %v1250_v16 = vadd.f32 %v1039_v14, %v385_v6  ;;  %v1282_v17 = vadd.f32 %v1167_v15, %v417_v7 }
 0x153   : > { %v1482_v13 = vmul.f32 %v2982_v36, %v1411_v9  ;;  %v2271_v18 = vpack.c.bf16 %v1584_v10, %v1584_v10  ;;  %v2303_v19 = vpack.c.bf16 %v1616_v11, %v1616_v11  ;;  %v1041_v22 = vpop.f32.mrf.mxu0  ;;  %v1169_v23 = vpop.f32.mrf.mxu1 }
 0x154   : > { %v1521_v20 = vadd.f32 %v2987_v39, %v1450_v12  ;;  %1315 = vst.msk [vmem:[#allocation2 + $0x78] sm:$0xff] %vm305_vm0, %v1250_v16  ;;  %1347 = vst.msk [vmem:[#allocation2 + $0x178] sm:$0xff] %vm305_vm0, %v1282_v17  ;;  %v389_v22 = vld [vmem:[#allocation2 + $0x98] sm:$0xff] }
 0x155   : > { %v1553_v21 = vadd.f32 %v2987_v39, %v1482_v13  ;;  %v1380_v26 = vld [vmem:[#allocation2 + $0x68] sm:$0xff]  ;;  %1905 = vst.msk [vmem:[%s3004_s14 + $0x2c] sm:$0xf] %vm1893_vm1, %v2271_v18  ;;  %1937 = vst.msk [vmem:[%s3004_s14 + $0xac] sm:$0xf] %vm1893_vm1, %v2303_v19  ;;  %v1044_v32 = vpop.f32.mrf.mxu0  ;;  %v1172_v33 = vpop.f32.mrf.mxu1  ;;  %v421_v23 = vld [vmem:[#allocation2 + $0x198] sm:$0xff] }
 0x156   : > { %v1412_v27 = vld [vmem:[#allocation2 + $0x168] sm:$0xff]  ;;  %v1585_v28 = vmax.f32 %v1521_v20, 0.0  ;;  %v1451_v30 = vmul.f32 %v2982_v36, %v1380_v26  ;;  %v1251_v34 = vadd.f32 %v1044_v32, %v386_v24  ;;  %v1283_v35 = vadd.f32 %v1172_v33, %v418_v25 }
 0x157   : > { %v1617_v29 = vmax.f32 %v1553_v21, 0.0  ;;  %v1483_v31 = vmul.f32 %v2982_v36, %v1412_v27  ;;  %v1046_v45 = vpop.f32.mrf.mxu0  ;;  %v1174_v46 = vpop.f32.mrf.mxu1 }
 0x158   : > { %v2272_v38 = vpack.c.bf16 %v1585_v28, %v1585_v28  ;;  %v1522_v41 = vadd.f32 %v2987_v39, %v1451_v30  ;;  %1316 = vst.msk [vmem:[#allocation2 + $0x80] sm:$0xff] %vm305_vm0, %v1251_v34  ;;  %1348 = vst.msk [vmem:[#allocation2 + $0x180] sm:$0xff] %vm305_vm0, %v1283_v35 }
 0x159   : > { %v2304_v40 = vpack.c.bf16 %v1617_v29, %v1617_v29  ;;  %v1554_v42 = vadd.f32 %v2987_v39, %v1483_v31  ;;  %v1381_v43 = vld [vmem:[#allocation2 + $0x70] sm:$0xff]  ;;  %v1047_v52 = vpop.f32.mrf.mxu0  ;;  %v1175_v53 = vpop.f32.mrf.mxu1 }
 0x15a   : > { %v1413_v44 = vld [vmem:[#allocation2 + $0x170] sm:$0xff]  ;;  %v1452_v48 = vmul.f32 %v2982_v36, %v1381_v43  ;;  %1906 = vst.msk [vmem:[%s3004_s14 + $0x30] sm:$0xf] %vm1893_vm1, %v2272_v38  ;;  %v1586_v50 = vmax.f32 %v1522_v41, 0.0  ;;  %v1252_v56 = vadd.f32 %v1047_v52, %v387_v37  ;;  %v1284_v57 = vadd.f32 %v1175_v53, %v419_v47  ;;  %v422_v43 = vld [vmem:[#allocation2 + $0x1a0] sm:$0xff] }
 0x15b   : > { %v1484_v49 = vmul.f32 %v2982_v36, %v1413_v44  ;;  %1938 = vst.msk [vmem:[%s3004_s14 + $0xb0] sm:$0xf] %vm1893_vm1, %v2304_v40  ;;  %v1618_v51 = vmax.f32 %v1554_v42, 0.0  ;;  %v1382_v60 = vld [vmem:[#allocation2 + $0x78] sm:$0xff]  ;;  %v1049_v62 = vpop.f32.mrf.mxu0  ;;  %v1177_v63 = vpop.f32.mrf.mxu1  ;;  %v390_v42 = vld [vmem:[#allocation2 + $0xa0] sm:$0xff] }
 0x15c   : > { %v1523_v54 = vadd.f32 %v2987_v39, %v1452_v48  ;;  %v2273_v58 = vpack.c.bf16 %v1586_v50, %v1586_v50  ;;  %v1414_v61 = vld [vmem:[#allocation2 + $0x178] sm:$0xff]  ;;  %v1453_v2 = vmul.f32 %v2982_v36, %v1382_v60  ;;  %1317 = vst.msk [vmem:[#allocation2 + $0x88] sm:$0xff] %vm305_vm0, %v1252_v56  ;;  %1349 = vst.msk [vmem:[#allocation2 + $0x188] sm:$0xff] %vm305_vm0, %v1284_v57 }
 0x15d   : > { %v1555_v55 = vadd.f32 %v2987_v39, %v1484_v49  ;;  %v2305_v59 = vpack.c.bf16 %v1618_v51, %v1618_v51  ;;  %v1485_v3 = vmul.f32 %v2982_v36, %v1414_v61  ;;  %v1052_v6 = vpop.f32.mrf.mxu0  ;;  %v1180_v7 = vpop.f32.mrf.mxu1 }
 0x15e   : > { %v1587_v0 = vmax.f32 %v1523_v54, 0.0  ;;  %1907 = vst.msk [vmem:[%s3004_s14 + $0x34] sm:$0xf] %vm1893_vm1, %v2273_v58  ;;  %v1524_v10 = vadd.f32 %v2987_v39, %v1453_v2  ;;  %v1253_v14 = vadd.f32 %v1052_v6, %v388_v4  ;;  %v1285_v15 = vadd.f32 %v1180_v7, %v420_v5  ;;  %v391_v54 = vld [vmem:[#allocation2 + $0xa8] sm:$0xff] }
 0x15f   : > { %v1619_v1 = vmax.f32 %v1555_v55, 0.0  ;;  %1939 = vst.msk [vmem:[%s3004_s14 + $0xb4] sm:$0xf] %vm1893_vm1, %v2305_v59  ;;  %v1556_v11 = vadd.f32 %v2987_v39, %v1485_v3  ;;  %v1383_v12 = vld [vmem:[#allocation2 + $0x80] sm:$0xff]  ;;  %v1054_v16 = vpop.f32.mrf.mxu0  ;;  %v1182_v17 = vpop.f32.mrf.mxu1  ;;  %v423_v55 = vld [vmem:[#allocation2 + $0x1a8] sm:$0xff] }
 0x160   : > { %v2274_v8 = vpack.c.bf16 %v1587_v0, %v1587_v0  ;;  %v1415_v13 = vld [vmem:[#allocation2 + $0x180] sm:$0xff]  ;;  %v1588_v18 = vmax.f32 %v1524_v10, 0.0  ;;  %v1454_v20 = vmul.f32 %v2982_v36, %v1383_v12  ;;  %1318 = vst.msk [vmem:[#allocation2 + $0x90] sm:$0xff] %vm305_vm0, %v1253_v14  ;;  %1350 = vst.msk [vmem:[#allocation2 + $0x190] sm:$0xff] %vm305_vm0, %v1285_v15 }
 0x161   : > { %v2306_v9 = vpack.c.bf16 %v1619_v1, %v1619_v1  ;;  %v1620_v19 = vmax.f32 %v1556_v11, 0.0  ;;  %v1486_v21 = vmul.f32 %v2982_v36, %v1415_v13  ;;  %v1055_v24 = vpop.f32.mrf.mxu0  ;;  %v1183_v25 = vpop.f32.mrf.mxu1 }
 0x162   : > { %1908 = vst.msk [vmem:[%s3004_s14 + $0x38] sm:$0xf] %vm1893_vm1, %v2274_v8  ;;  %v2275_v26 = vpack.c.bf16 %v1588_v18, %v1588_v18  ;;  %v1525_v28 = vadd.f32 %v2987_v39, %v1454_v20  ;;  %v1254_v32 = vadd.f32 %v1055_v24, %v389_v22  ;;  %v1286_v33 = vadd.f32 %v1183_v25, %v421_v23  ;;  %v392_v8 = vld [vmem:[#allocation2 + $0xb0] sm:$0xff] }
 0x163   : > { %1940 = vst.msk [vmem:[%s3004_s14 + $0xb8] sm:$0xf] %vm1893_vm1, %v2306_v9  ;;  %v2307_v27 = vpack.c.bf16 %v1620_v19, %v1620_v19  ;;  %v1557_v29 = vadd.f32 %v2987_v39, %v1486_v21  ;;  %v1384_v30 = vld [vmem:[#allocation2 + $0x88] sm:$0xff]  ;;  %v1057_v34 = vpop.f32.mrf.mxu0  ;;  %v1185_v35 = vpop.f32.mrf.mxu1  ;;  %v424_v9 = vld [vmem:[#allocation2 + $0x1b0] sm:$0xff] }
 0x164   : > { %v1416_v31 = vld [vmem:[#allocation2 + $0x188] sm:$0xff]  ;;  %1909 = vst.msk [vmem:[%s3004_s14 + $0x3c] sm:$0xf] %vm1893_vm1, %v2275_v26  ;;  %v1589_v37 = vmax.f32 %v1525_v28, 0.0  ;;  %v1455_v40 = vmul.f32 %v2982_v36, %v1384_v30  ;;  %v393_v26 = vld [vmem:[#allocation2 + $0xb8] sm:$0xff] }
 0x165   : > { %1941 = vst.msk [vmem:[%s3004_s14 + $0xbc] sm:$0xf] %vm1893_vm1, %v2307_v27  ;;  %v1621_v38 = vmax.f32 %v1557_v29, 0.0  ;;  %v1487_v41 = vmul.f32 %v2982_v36, %v1416_v31  ;;  %v1060_v44 = vpop.f32.mrf.mxu0  ;;  %v1188_v45 = vpop.f32.mrf.mxu1  ;;  %v425_v27 = vld [vmem:[#allocation2 + $0x1b8] sm:$0xff] }
 0x166   : > { %1319 = vst.msk [vmem:[#allocation2 + $0x98] sm:$0xff] %vm305_vm0, %v1254_v32  ;;  %1351 = vst.msk [vmem:[#allocation2 + $0x198] sm:$0xff] %vm305_vm0, %v1286_v33  ;;  %v2276_v46 = vpack.c.bf16 %v1589_v37, %v1589_v37  ;;  %v1526_v48 = vadd.f32 %v2987_v39, %v1455_v40  ;;  %v1255_v50 = vadd.f32 %v1060_v44, %v390_v42  ;;  %v394_v40 = vld [vmem:[#allocation2 + $0xc0] sm:$0xff] }
 0x167   : > { %v2308_v47 = vpack.c.bf16 %v1621_v38, %v1621_v38  ;;  %v1558_v49 = vadd.f32 %v2987_v39, %v1487_v41  ;;  %v1287_v51 = vadd.f32 %v1188_v45, %v422_v43  ;;  %v1062_v52 = vpop.f32.mrf.mxu0  ;;  %v1190_v53 = vpop.f32.mrf.mxu1  ;;  %v1385_v58 = vld [vmem:[#allocation2 + $0x90] sm:$0xff] }
 0x168   : > { %1910 = vst.msk [vmem:[%s3004_s14 + $0x40] sm:$0xf] %vm1893_vm1, %v2276_v46  ;;  %v1590_v56 = vmax.f32 %v1526_v48, 0.0  ;;  %v1417_v59 = vld [vmem:[#allocation2 + $0x190] sm:$0xff]  ;;  %v1456_v60 = vmul.f32 %v2982_v36, %v1385_v58 }
 0x169   : > { %1942 = vst.msk [vmem:[%s3004_s14 + $0xc0] sm:$0xf] %vm1893_vm1, %v2308_v47  ;;  %v1622_v57 = vmax.f32 %v1558_v49, 0.0  ;;  %v1488_v61 = vmul.f32 %v2982_v36, %v1417_v59  ;;  %v1063_v62 = vpop.f32.mrf.mxu0  ;;  %v1191_v63 = vpop.f32.mrf.mxu1  ;;  %v426_v49 = vld [vmem:[#allocation2 + $0x1c0] sm:$0xff] }
 0x16a   : > { %1320 = vst.msk [vmem:[#allocation2 + $0xa0] sm:$0xff] %vm305_vm0, %v1255_v50  ;;  %1352 = vst.msk [vmem:[#allocation2 + $0x1a0] sm:$0xff] %vm305_vm0, %v1287_v51  ;;  %v2277_v0 = vpack.c.bf16 %v1590_v56, %v1590_v56  ;;  %v1256_v2 = vadd.f32 %v1063_v62, %v391_v54  ;;  %v1288_v3 = vadd.f32 %v1191_v63, %v423_v55 }
 0x16b   : > { %v2309_v1 = vpack.c.bf16 %v1622_v57, %v1622_v57  ;;  %v1527_v4 = vadd.f32 %v2987_v39, %v1456_v60  ;;  %v1559_v5 = vadd.f32 %v2987_v39, %v1488_v61  ;;  %v1065_v6 = vpop.f32.mrf.mxu0  ;;  %v1193_v7 = vpop.f32.mrf.mxu1 }
 0x16c   : > { %1911 = vst.msk [vmem:[%s3004_s14 + $0x44] sm:$0xf] %vm1893_vm1, %v2277_v0  ;;  %v395_v6 = vld [vmem:[#allocation2 + $0xc8] sm:$0xff] }
 0x16d   : > { %1943 = vst.msk [vmem:[%s3004_s14 + $0xc4] sm:$0xf] %vm1893_vm1, %v2309_v1  ;;  %v1386_v10 = vld [vmem:[#allocation2 + $0x98] sm:$0xff]  ;;  %v1591_v12 = vmax.f32 %v1527_v4, 0.0  ;;  %v1623_v13 = vmax.f32 %v1559_v5, 0.0  ;;  %v1068_v16 = vpop.f32.mrf.mxu0  ;;  %v1196_v17 = vpop.f32.mrf.mxu1  ;;  %v427_v7 = vld [vmem:[#allocation2 + $0x1c8] sm:$0xff] }
 0x16e   : > { %v1418_v11 = vld [vmem:[#allocation2 + $0x198] sm:$0xff]  ;;  %1321 = vst.msk [vmem:[#allocation2 + $0xa8] sm:$0xff] %vm305_vm0, %v1256_v2  ;;  %1353 = vst.msk [vmem:[#allocation2 + $0x1a8] sm:$0xff] %vm305_vm0, %v1288_v3  ;;  %v1457_v14 = vmul.f32 %v2982_v36, %v1386_v10  ;;  %v1257_v18 = vadd.f32 %v1068_v16, %v392_v8  ;;  %v1289_v19 = vadd.f32 %v1196_v17, %v424_v9 }
 0x16f   : > { %v1489_v15 = vmul.f32 %v2982_v36, %v1418_v11  ;;  %v2278_v20 = vpack.c.bf16 %v1591_v12, %v1591_v12  ;;  %v2310_v21 = vpack.c.bf16 %v1623_v13, %v1623_v13  ;;  %v1070_v24 = vpop.f32.mrf.mxu0  ;;  %v1198_v25 = vpop.f32.mrf.mxu1 }
 0x170   : > { %v1528_v22 = vadd.f32 %v2987_v39, %v1457_v14  ;;  %1322 = vst.msk [vmem:[#allocation2 + $0xb0] sm:$0xff] %vm305_vm0, %v1257_v18  ;;  %1354 = vst.msk [vmem:[#allocation2 + $0x1b0] sm:$0xff] %vm305_vm0, %v1289_v19  ;;  %v428_v24 = vld [vmem:[#allocation2 + $0x1d0] sm:$0xff] }
 0x171   : > { %v1560_v23 = vadd.f32 %v2987_v39, %v1489_v15  ;;  %v1387_v28 = vld [vmem:[#allocation2 + $0xa0] sm:$0xff]  ;;  %1912 = vst.msk [vmem:[%s3004_s14 + $0x48] sm:$0xf] %vm1893_vm1, %v2278_v20  ;;  %1944 = vst.msk [vmem:[%s3004_s14 + $0xc8] sm:$0xf] %vm1893_vm1, %v2310_v21  ;;  %v1071_v34 = vpop.f32.mrf.mxu0  ;;  %v1199_v35 = vpop.f32.mrf.mxu1 }
 0x172   : > { %v1419_v29 = vld [vmem:[#allocation2 + $0x1a0] sm:$0xff]  ;;  %v1592_v30 = vmax.f32 %v1528_v22, 0.0  ;;  %v1458_v32 = vmul.f32 %v2982_v36, %v1387_v28  ;;  %v1258_v37 = vadd.f32 %v1071_v34, %v393_v26  ;;  %v1290_v38 = vadd.f32 %v1199_v35, %v425_v27 }
 0x173   : > { %v1624_v31 = vmax.f32 %v1560_v23, 0.0  ;;  %v1490_v33 = vmul.f32 %v2982_v36, %v1419_v29  ;;  %v1073_v47 = vpop.f32.mrf.mxu0  ;;  %v1201_v48 = vpop.f32.mrf.mxu1  ;;  %v3223_v21 = vld [vmem:[%s3378_s2] ss:$0 sm:$0xff]  ;;  %v396_v23 = vld [vmem:[#allocation2 + $0xd0] sm:$0xff] }
 0x174   : > { %v2279_v41 = vpack.c.bf16 %v1592_v30, %v1592_v30  ;;  %v1529_v43 = vadd.f32 %v2987_v39, %v1458_v32  ;;  %1323 = vst.msk [vmem:[#allocation2 + $0xb8] sm:$0xff] %vm305_vm0, %v1258_v37  ;;  %1355 = vst.msk [vmem:[#allocation2 + $0x1b8] sm:$0xff] %vm305_vm0, %v1290_v38  ;;  %v3232_v29 = vld [vmem:[%s3379_s3] ss:$0 sm:$0xff] }
 0x175   : > { %v2311_v42 = vpack.c.bf16 %v1624_v31, %v1624_v31  ;;  %v1561_v44 = vadd.f32 %v2987_v39, %v1490_v33  ;;  %v1388_v45 = vld [vmem:[#allocation2 + $0xa8] sm:$0xff]  ;;  %v1076_v54 = vpop.f32.mrf.mxu0  ;;  %v1204_v55 = vpop.f32.mrf.mxu1 }
 0x176   : > { %v1420_v46 = vld [vmem:[#allocation2 + $0x1a8] sm:$0xff]  ;;  %v1459_v50 = vmul.f32 %v2982_v36, %v1388_v45  ;;  %1913 = vst.msk [vmem:[%s3004_s14 + $0x4c] sm:$0xf] %vm1893_vm1, %v2279_v41  ;;  %v1593_v52 = vmax.f32 %v1529_v43, 0.0  ;;  %v1259_v58 = vadd.f32 %v1076_v54, %v394_v40  ;;  %v1291_v59 = vadd.f32 %v1204_v55, %v426_v49  ;;  %v429_v45 = vld [vmem:[#allocation2 + $0x1d8] sm:$0xff] }
 0x177   : > { %v1491_v51 = vmul.f32 %v2982_v36, %v1420_v46  ;;  %1945 = vst.msk [vmem:[%s3004_s14 + $0xcc] sm:$0xf] %vm1893_vm1, %v2311_v42  ;;  %v1625_v53 = vmax.f32 %v1561_v44, 0.0  ;;  %v1389_v62 = vld [vmem:[#allocation2 + $0xb0] sm:$0xff]  ;;  %v1078_v0 = vpop.f32.mrf.mxu0  ;;  %v1206_v1 = vpop.f32.mrf.mxu1  ;;  %v397_v44 = vld [vmem:[#allocation2 + $0xd8] sm:$0xff] }
 0x178   : > { %v1530_v56 = vadd.f32 %v2987_v39, %v1459_v50  ;;  %v2280_v60 = vpack.c.bf16 %v1593_v52, %v1593_v52  ;;  %v1421_v63 = vld [vmem:[#allocation2 + $0x1b0] sm:$0xff]  ;;  %v1460_v4 = vmul.f32 %v2982_v36, %v1389_v62  ;;  %1324 = vst.msk [vmem:[#allocation2 + $0xc0] sm:$0xff] %vm305_vm0, %v1259_v58  ;;  %1356 = vst.msk [vmem:[#allocation2 + $0x1c0] sm:$0xff] %vm305_vm0, %v1291_v59 }
 0x179   : > { %v1562_v57 = vadd.f32 %v2987_v39, %v1491_v51  ;;  %v2312_v61 = vpack.c.bf16 %v1625_v53, %v1625_v53  ;;  %v1492_v5 = vmul.f32 %v2982_v36, %v1421_v63  ;;  %v1079_v8 = vpop.f32.mrf.mxu0  ;;  %v1207_v9 = vpop.f32.mrf.mxu1 }
 0x17a   : > { %v1594_v2 = vmax.f32 %v1530_v56, 0.0  ;;  %1914 = vst.msk [vmem:[%s3004_s14 + $0x50] sm:$0xf] %vm1893_vm1, %v2280_v60  ;;  %v1531_v12 = vadd.f32 %v2987_v39, %v1460_v4  ;;  %v1260_v15 = vadd.f32 %v1079_v8, %v395_v6  ;;  %v1292_v16 = vadd.f32 %v1207_v9, %v427_v7  ;;  %v398_v56 = vld [vmem:[#allocation2 + $0xe0] sm:$0xff] }
 0x17b   : > { %v1626_v3 = vmax.f32 %v1562_v57, 0.0  ;;  %1946 = vst.msk [vmem:[%s3004_s14 + $0xd0] sm:$0xf] %vm1893_vm1, %v2312_v61  ;;  %v1563_v36 = vadd.f32 %v2987_v39, %v1492_v5  ;;  %v1390_v13 = vld [vmem:[#allocation2 + $0xb8] sm:$0xff]  ;;  %v1081_v17 = vpop.f32.mrf.mxu0  ;;  %v1209_v18 = vpop.f32.mrf.mxu1  ;;  %v430_v57 = vld [vmem:[#allocation2 + $0x1e0] sm:$0xff] }
 0x17c   : > { %v2281_v10 = vpack.c.bf16 %v1594_v2, %v1594_v2  ;;  %v1422_v14 = vld [vmem:[#allocation2 + $0x1b8] sm:$0xff]  ;;  %v1595_v19 = vmax.f32 %v1531_v12, 0.0  ;;  %v1461_v22 = vmul.f32 %v3223_v21, %v1390_v13  ;;  %1325 = vst.msk [vmem:[#allocation2 + $0xc8] sm:$0xff] %vm305_vm0, %v1260_v15  ;;  %1357 = vst.msk [vmem:[#allocation2 + $0x1c8] sm:$0xff] %vm305_vm0, %v1292_v16 }
 0x17d   : > { %v2313_v11 = vpack.c.bf16 %v1626_v3, %v1626_v3  ;;  %v1627_v20 = vmax.f32 %v1563_v36, 0.0  ;;  %v1493_v39 = vmul.f32 %v3223_v21, %v1422_v14  ;;  %v1084_v25 = vpop.f32.mrf.mxu0  ;;  %v1212_v26 = vpop.f32.mrf.mxu1 }
 0x17e   : > { %1915 = vst.msk [vmem:[%s3004_s14 + $0x54] sm:$0xf] %vm1893_vm1, %v2281_v10  ;;  %v2282_v27 = vpack.c.bf16 %v1595_v19, %v1595_v19  ;;  %v1532_v30 = vadd.f32 %v3232_v29, %v1461_v22  ;;  %v1261_v34 = vadd.f32 %v1084_v25, %v396_v23  ;;  %v1293_v35 = vadd.f32 %v1212_v26, %v428_v24  ;;  %v399_v10 = vld [vmem:[#allocation2 + $0xe8] sm:$0xff] }
 0x17f   : > { %1947 = vst.msk [vmem:[%s3004_s14 + $0xd4] sm:$0xf] %vm1893_vm1, %v2313_v11  ;;  %v2314_v28 = vpack.c.bf16 %v1627_v20, %v1627_v20  ;;  %v1564_v31 = vadd.f32 %v3232_v29, %v1493_v39  ;;  %v1391_v32 = vld [vmem:[#allocation2 + $0xc0] sm:$0xff]  ;;  %v1086_v37 = vpop.f32.mrf.mxu0  ;;  %v1214_v38 = vpop.f32.mrf.mxu1  ;;  %v431_v11 = vld [vmem:[#allocation2 + $0x1e8] sm:$0xff] }
 0x180   : > { %v1423_v33 = vld [vmem:[#allocation2 + $0x1c0] sm:$0xff]  ;;  %1916 = vst.msk [vmem:[%s3004_s14 + $0x58] sm:$0xf] %vm1893_vm1, %v2282_v27  ;;  %v1596_v40 = vmax.f32 %v1532_v30, 0.0  ;;  %v1462_v42 = vmul.f32 %v3223_v21, %v1391_v32  ;;  %v400_v27 = vld [vmem:[#allocation2 + $0xf0] sm:$0xff] }
 0x181   : > { %1948 = vst.msk [vmem:[%s3004_s14 + $0xd8] sm:$0xf] %vm1893_vm1, %v2314_v28  ;;  %v1628_v41 = vmax.f32 %v1564_v31, 0.0  ;;  %v1494_v43 = vmul.f32 %v3223_v21, %v1423_v33  ;;  %v1087_v46 = vpop.f32.mrf.mxu0  ;;  %v1215_v47 = vpop.f32.mrf.mxu1  ;;  %v432_v28 = vld [vmem:[#allocation2 + $0x1f0] sm:$0xff] }
 0x182   : > { %1326 = vst.msk [vmem:[#allocation2 + $0xd0] sm:$0xff] %vm305_vm0, %v1261_v34  ;;  %1358 = vst.msk [vmem:[#allocation2 + $0x1d0] sm:$0xff] %vm305_vm0, %v1293_v35  ;;  %v2283_v48 = vpack.c.bf16 %v1596_v40, %v1596_v40  ;;  %v1533_v50 = vadd.f32 %v3232_v29, %v1462_v42  ;;  %v1262_v52 = vadd.f32 %v1087_v46, %v397_v44  ;;  %v401_v42 = vld [vmem:[#allocation2 + $0xf8] sm:$0xff] }
 0x183   : > { %v2315_v49 = vpack.c.bf16 %v1628_v41, %v1628_v41  ;;  %v1565_v51 = vadd.f32 %v3232_v29, %v1494_v43  ;;  %v1294_v53 = vadd.f32 %v1215_v47, %v429_v45  ;;  %v1089_v54 = vpop.f32.mrf.mxu0  ;;  %v1217_v55 = vpop.f32.mrf.mxu1  ;;  %v1392_v60 = vld [vmem:[#allocation2 + $0xc8] sm:$0xff] }
 0x184   : > { %1917 = vst.msk [vmem:[%s3004_s14 + $0x5c] sm:$0xf] %vm1893_vm1, %v2283_v48  ;;  %v1597_v58 = vmax.f32 %v1533_v50, 0.0  ;;  %v1424_v61 = vld [vmem:[#allocation2 + $0x1c8] sm:$0xff]  ;;  %v1463_v62 = vmul.f32 %v3223_v21, %v1392_v60 }
 0x185   : > { %1949 = vst.msk [vmem:[%s3004_s14 + $0xdc] sm:$0xf] %vm1893_vm1, %v2315_v49  ;;  %v1629_v59 = vmax.f32 %v1565_v51, 0.0  ;;  %v1495_v63 = vmul.f32 %v3223_v21, %v1424_v61  ;;  %v1092_v0 = vpop.f32.mrf.mxu0  ;;  %v1220_v1 = vpop.f32.mrf.mxu1  ;;  %v433_v51 = vld [vmem:[#allocation2 + $0x1f8] sm:$0xff] }
 0x186   : > { %1327 = vst.msk [vmem:[#allocation2 + $0xd8] sm:$0xff] %vm305_vm0, %v1262_v52  ;;  %1359 = vst.msk [vmem:[#allocation2 + $0x1d8] sm:$0xff] %vm305_vm0, %v1294_v53  ;;  %v2284_v2 = vpack.c.bf16 %v1597_v58, %v1597_v58  ;;  %v1263_v4 = vadd.f32 %v1092_v0, %v398_v56  ;;  %v1295_v5 = vadd.f32 %v1220_v1, %v430_v57 }
 0x187   : > { %v2316_v3 = vpack.c.bf16 %v1629_v59, %v1629_v59  ;;  %v1534_v6 = vadd.f32 %v3232_v29, %v1463_v62  ;;  %v1566_v7 = vadd.f32 %v3232_v29, %v1495_v63  ;;  %v1094_v8 = vpop.f32.mrf.mxu0  ;;  %v1222_v9 = vpop.f32.mrf.mxu1 }
 0x188   : > { %1918 = vst.msk [vmem:[%s3004_s14 + $0x60] sm:$0xf] %vm1893_vm1, %v2284_v2 }
 0x189   : > { %1950 = vst.msk [vmem:[%s3004_s14 + $0xe0] sm:$0xf] %vm1893_vm1, %v2316_v3  ;;  %v1393_v12 = vld [vmem:[#allocation2 + $0xd0] sm:$0xff]  ;;  %v1598_v13 = vmax.f32 %v1534_v6, 0.0  ;;  %v1630_v14 = vmax.f32 %v1566_v7, 0.0  ;;  %v1095_v17 = vpop.f32.mrf.mxu0  ;;  %v1223_v18 = vpop.f32.mrf.mxu1 }
 0x18a   : > { %v1425_v36 = vld [vmem:[#allocation2 + $0x1d0] sm:$0xff]  ;;  %1328 = vst.msk [vmem:[#allocation2 + $0xe0] sm:$0xff] %vm305_vm0, %v1263_v4  ;;  %1360 = vst.msk [vmem:[#allocation2 + $0x1e0] sm:$0xff] %vm305_vm0, %v1295_v5  ;;  %v1464_v15 = vmul.f32 %v3223_v21, %v1393_v12  ;;  %v1264_v19 = vadd.f32 %v1095_v17, %v399_v10  ;;  %v1296_v20 = vadd.f32 %v1223_v18, %v431_v11 }
 0x18b   : > { %v1496_v16 = vmul.f32 %v3223_v21, %v1425_v36  ;;  %v2285_v22 = vpack.c.bf16 %v1598_v13, %v1598_v13  ;;  %v2317_v39 = vpack.c.bf16 %v1630_v14, %v1630_v14  ;;  %v1097_v25 = vpop.f32.mrf.mxu0  ;;  %v1225_v26 = vpop.f32.mrf.mxu1 }
 0x18c   : > { %v1535_v23 = vadd.f32 %v3232_v29, %v1464_v15  ;;  %1329 = vst.msk [vmem:[#allocation2 + $0xe8] sm:$0xff] %vm305_vm0, %v1264_v19  ;;  %1361 = vst.msk [vmem:[#allocation2 + $0x1e8] sm:$0xff] %vm305_vm0, %v1296_v20 }
 0x18d   : > { %v1567_v24 = vadd.f32 %v3232_v29, %v1496_v16  ;;  %v1394_v30 = vld [vmem:[#allocation2 + $0xd8] sm:$0xff]  ;;  %1919 = vst.msk [vmem:[%s3004_s14 + $0x64] sm:$0xf] %vm1893_vm1, %v2285_v22  ;;  %1951 = vst.msk [vmem:[%s3004_s14 + $0xe4] sm:$0xf] %vm1893_vm1, %v2317_v39  ;;  %v1100_v37 = vpop.f32.mrf.mxu0  ;;  %v1228_v38 = vpop.f32.mrf.mxu1 }
 0x18e   : > { %v1426_v31 = vld [vmem:[#allocation2 + $0x1d8] sm:$0xff]  ;;  %v1599_v32 = vmax.f32 %v1535_v23, 0.0  ;;  %v1465_v34 = vmul.f32 %v3223_v21, %v1394_v30  ;;  %v1265_v40 = vadd.f32 %v1100_v37, %v400_v27  ;;  %v1297_v41 = vadd.f32 %v1228_v38, %v432_v28 }
 0x18f   : > { %v1631_v33 = vmax.f32 %v1567_v24, 0.0  ;;  %v1497_v35 = vmul.f32 %v3223_v21, %v1426_v31  ;;  %v1102_v49 = vpop.f32.mrf.mxu0  ;;  %v1230_v50 = vpop.f32.mrf.mxu1 }
 0x190   : > { %v2286_v43 = vpack.c.bf16 %v1599_v32, %v1599_v32  ;;  %v1536_v45 = vadd.f32 %v3232_v29, %v1465_v34  ;;  %1330 = vst.msk [vmem:[#allocation2 + $0xf0] sm:$0xff] %vm305_vm0, %v1265_v40  ;;  %1362 = vst.msk [vmem:[#allocation2 + $0x1f0] sm:$0xff] %vm305_vm0, %v1297_v41 }
 0x191   : > { %v2318_v44 = vpack.c.bf16 %v1631_v33, %v1631_v33  ;;  %v1568_v46 = vadd.f32 %v3232_v29, %v1497_v35  ;;  %v1395_v47 = vld [vmem:[#allocation2 + $0xe0] sm:$0xff]  ;;  %v1103_v56 = vpop.f32.mrf.mxu0  ;;  %v1231_v57 = vpop.f32.mrf.mxu1 }
 0x192   : > { %v1427_v48 = vld [vmem:[#allocation2 + $0x1e0] sm:$0xff]  ;;  %v1466_v52 = vmul.f32 %v3223_v21, %v1395_v47  ;;  %1920 = vst.msk [vmem:[%s3004_s14 + $0x68] sm:$0xf] %vm1893_vm1, %v2286_v43  ;;  %v1600_v54 = vmax.f32 %v1536_v45, 0.0  ;;  %v1266_v60 = vadd.f32 %v1103_v56, %v401_v42  ;;  %v1298_v61 = vadd.f32 %v1231_v57, %v433_v51 }
 0x193   : > { %v1498_v53 = vmul.f32 %v3223_v21, %v1427_v48  ;;  %1952 = vst.msk [vmem:[%s3004_s14 + $0xe8] sm:$0xf] %vm1893_vm1, %v2318_v44  ;;  %v1632_v55 = vmax.f32 %v1568_v46, 0.0  ;;  %v1396_v0 = vld [vmem:[#allocation2 + $0xe8] sm:$0xff]  ;;  %v1105_v2 = vpop.f32.mrf.mxu0  ;;  %v1233_v3 = vpop.f32.mrf.mxu1 }
 0x194   : > { %v1537_v58 = vadd.f32 %v3232_v29, %v1466_v52  ;;  %v2287_v62 = vpack.c.bf16 %v1600_v54, %v1600_v54  ;;  %v1428_v1 = vld [vmem:[#allocation2 + $0x1e8] sm:$0xff]  ;;  %v1467_v6 = vmul.f32 %v3223_v21, %v1396_v0  ;;  %1331 = vst.msk [vmem:[#allocation2 + $0xf8] sm:$0xff] %vm305_vm0, %v1266_v60  ;;  %1363 = vst.msk [vmem:[#allocation2 + $0x1f8] sm:$0xff] %vm305_vm0, %v1298_v61 }
 0x195   : > { %v1569_v59 = vadd.f32 %v3232_v29, %v1498_v53  ;;  %v2319_v63 = vpack.c.bf16 %v1632_v55, %v1632_v55  ;;  %v1499_v7 = vmul.f32 %v3223_v21, %v1428_v1 }
 0x196   : > { %v1601_v4 = vmax.f32 %v1537_v58, 0.0  ;;  %1921 = vst.msk [vmem:[%s3004_s14 + $0x6c] sm:$0xf] %vm1893_vm1, %v2287_v62  ;;  %v1538_v10 = vadd.f32 %v3232_v29, %v1467_v6 }
 0x197   : > { %v1633_v5 = vmax.f32 %v1569_v59, 0.0  ;;  %1953 = vst.msk [vmem:[%s3004_s14 + $0xec] sm:$0xf] %vm1893_vm1, %v2319_v63  ;;  %v1570_v11 = vadd.f32 %v3232_v29, %v1499_v7  ;;  %v1397_v12 = vld [vmem:[#allocation2 + $0xf0] sm:$0xff] }
 0x198   : > { %v2288_v8 = vpack.c.bf16 %v1601_v4, %v1601_v4  ;;  %v1429_v36 = vld [vmem:[#allocation2 + $0x1f0] sm:$0xff]  ;;  %v1602_v13 = vmax.f32 %v1538_v10, 0.0  ;;  %v1468_v15 = vmul.f32 %v3223_v21, %v1397_v12 }
 0x199   : > { %v2320_v9 = vpack.c.bf16 %v1633_v5, %v1633_v5  ;;  %v1634_v14 = vmax.f32 %v1570_v11, 0.0  ;;  %v1500_v16 = vmul.f32 %v3223_v21, %v1429_v36 }
 0x19a   : > { %1922 = vst.msk [vmem:[%s3004_s14 + $0x70] sm:$0xf] %vm1893_vm1, %v2288_v8  ;;  %v2289_v17 = vpack.c.bf16 %v1602_v13, %v1602_v13  ;;  %v1539_v19 = vadd.f32 %v3232_v29, %v1468_v15 }
 0x19b   : > { %1954 = vst.msk [vmem:[%s3004_s14 + $0xf0] sm:$0xf] %vm1893_vm1, %v2320_v9  ;;  %v2321_v18 = vpack.c.bf16 %v1634_v14, %v1634_v14  ;;  %v1571_v20 = vadd.f32 %v3232_v29, %v1500_v16  ;;  %v1398_v22 = vld [vmem:[#allocation2 + $0xf8] sm:$0xff] }
 0x19c   : > { %v1430_v39 = vld [vmem:[#allocation2 + $0x1f8] sm:$0xff]  ;;  %1923 = vst.msk [vmem:[%s3004_s14 + $0x74] sm:$0xf] %vm1893_vm1, %v2289_v17  ;;  %v1603_v23 = vmax.f32 %v1539_v19, 0.0  ;;  %v1469_v25 = vmul.f32 %v3223_v21, %v1398_v22 }
 0x19d   : > { %1955 = vst.msk [vmem:[%s3004_s14 + $0xf4] sm:$0xf] %vm1893_vm1, %v2321_v18  ;;  %v1635_v24 = vmax.f32 %v1571_v20, 0.0  ;;  %v1501_v26 = vmul.f32 %v3223_v21, %v1430_v39 }
 0x19e   : > { %v2290_v27 = vpack.c.bf16 %v1603_v23, %v1603_v23  ;;  %v1540_v30 = vadd.f32 %v3232_v29, %v1469_v25 }
 0x19f   : > { %v2322_v28 = vpack.c.bf16 %v1635_v24, %v1635_v24  ;;  %v1572_v31 = vadd.f32 %v3232_v29, %v1501_v26 }
 0x1a0   : > { %1924 = vst.msk [vmem:[%s3004_s14 + $0x78] sm:$0xf] %vm1893_vm1, %v2290_v27  ;;  %v1604_v32 = vmax.f32 %v1540_v30, 0.0 }
 0x1a1   : > { %1956 = vst.msk [vmem:[%s3004_s14 + $0xf8] sm:$0xf] %vm1893_vm1, %v2322_v28  ;;  %v1636_v33 = vmax.f32 %v1572_v31, 0.0 }
 0x1a2   : > { %v2291_v21 = vpack.c.bf16 %v1604_v32, %v1604_v32 }
 0x1a3   : > { %v2323_v29 = vpack.c.bf16 %v1636_v33, %v1636_v33 }
 0x1a4   : > { %1925 = vst.msk [vmem:[%s3004_s14 + $0x7c] sm:$0xf] %vm1893_vm1, %v2291_v21 }
 0x1a5   : > { %1957 = vst.msk [vmem:[%s3004_s14 + $0xfc] sm:$0xf] %vm1893_vm1, %v2323_v29 }
 0x1a6   : > { %2543 = shalt.err (!%p2540_p5)
}
 0x1a7   : > { %s2544_s12 = scalar_lea.hbm %s3321_s8, 4096  ;;  %s2548_s21 = scalar_lea.hbm %s3380_s4, 16384 }
 0x1a8   : > { %p2545_p6 = scmp.ne.s32.totalorder %s3321_s8, %s2544_s12  ;;  %p2549_p10 = scmp.lt.s32.totalorder %s3321_s8, %s3380_s4 }
 0x1a9   : > { %p2550_p11 = scmp.lt.s32.totalorder %s2548_s21, %s2544_s12 }
 0x1aa   : > { %p2546_p7 = pnand %p2545_p6, %p2678_p4 }
 0x1ab   : > { %p2551_p12 = por %p2550_p11, %p2549_p10 }
 0x1ac   : > { %p2547_p9 = pneg %p2546_p7 }
 0x1ae   : > { %p2552_p13 = pnand %p2551_p12, %p2547_p9 }
 0x1b0   : > { %2555 = shalt.err (!%p2552_p13)
}
 0x1b1   : > { %s2611_s29 = smov 64   ;;  %s2612_s30 = smov 4  }
 0x1b2   : > { %2357 = dma.vmem_to_hbm [thread:$0]  (%p2678_p4), %s3323_s5, 4096, %s3321_s8, %s3331_s18, %s2611_s29, %s2611_s29, %s2612_s30  }
 0x1b3 PF: > { %p2363_p0 = scmp.ge.s32.totalorder %s2606_s20, 2  ;;  %s1988_s6 = sand.u32 1, %s2586_s15  }
 0x1b4   : > { %s1989_s7 = scalar_lea.sflag [#allocation4], %s1988_s6 }
 0x1b5   : > { %p2360_p1 = pnand %p2363_p0, %p2685_p8 }
 0x1b7   : > { %p2361_p2 = pneg %p2360_p1 }
 0x1b9   : > { %2581 = dma.done.wait (%p2361_p2), %s1989_s7, 4096  }
 0x1ba   : > { %2583 = vsyncadd (%p2361_p2), %s1989_s7, 4294963200  ;;  %s17_s20 = sadd.s32 1, %s2606_s20   ;;  %s3383_s15 = smov %s2590_s16 }
 0x1bb   : > { %p14_p3 = scmp.ge.s32.totalorder %s17_s20, 6   ;;  %s3384_s16 = smov %s2594_s17 }
 0x1bc   : > { %s3385_s17 = smov %s2691_s28  ;;  %s3386_s18 = smov %s2602_s19 }
 0x1bd   : > { %s3387_s19 = smov %s3389_s23  ;;  %16 = sbr.rel (!%p14_p3) target bundleno = 4 (0x4), region = 88 }
 0x1c2   :  { %1994 = vsyncpa [#allocation4], 1 }
 0x1c3   :  { %1996 = vsyncpa [#allocation4 + $0x1], 1 }

</bundles_post_ra>
